<compile_context>
chip_gen: v5e
topology: v5e:2x2
jax: 0.10.0
libtpu: 0.0.40
codegen_flags: <defaults>
</compile_context>

<pallas_src>
import functools
import math

import jax
import jax.numpy as jnp
import numpy as np
from jax import lax
from jax.experimental import pallas as pl
from jax.experimental.pallas import tpu as pltpu


def _round_up(v, m):
    return (v + m - 1) // m * m


def _prt_kernel(x_ref, wih_ref, whh_ref, b_i_ref, b_hn_ref, wfc_ref, bfc_ref,
                out_ref,
                gi_ref, h_all_ref,
                *, batch_p, hidden_p, matmul_dtype):
    """Fused GRU recurrence + fc1 + leaky_relu.

    x_ref    : (S*Bp, Np)   seq-major flattened, padded input (row i = (t=i//Bp, b=i%Bp))
    wih_ref  : (Np, 3*Hp)   lane-concatenated per-gate input weights [r | z | n]
    whh_ref  : (Hp, 3*Hp)   lane-concatenated per-gate hidden weights [r | z | n]
    b_i_ref  : (1, 3*Hp)    folded input-side biases [b_ir+b_hr | b_iz+b_hz | b_in]
    b_hn_ref : (1, Hp)      hidden bias of the n gate (multiplied by r)
    wfc_ref  : (Hp, Np)     fc1 weight (pre-transposed, padded);  bfc_ref: (1, Np)
    out_ref  : (S*Bp, Np)   leaky_relu(fc1(h_t)) for every (t, b) row
    gi_ref   : (S*Bp, 3*Hp) scratch: hoisted, fused input-gate activations
    h_all_ref: (S*Bp, Hp)   scratch: all hidden states
    """
    Bp = batch_p
    Hp = hidden_p
    SB = x_ref.shape[0]
    S = SB // Bp

    # ---- Phase 1: hoisted input projection, ONE fused matmul for all 3 gates ----
    x = x_ref[...].astype(matmul_dtype)
    gi_ref[...] = jnp.dot(x, wih_ref[...].astype(matmul_dtype),
                          preferred_element_type=jnp.float32) + b_i_ref[...]

    b_hn = b_hn_ref[...]          # (1, Hp) -- tiny, safe to hoist

    # ---- Phase 2: serial recurrence (kept in f32) ----
    # t = 0: h is identically zero -> skip the h @ W_hh matmul entirely.
    gi0 = gi_ref[pl.ds(0, Bp), :]
    r = jax.nn.sigmoid(gi0[:, 0:Hp])
    z = jax.nn.sigmoid(gi0[:, Hp:2 * Hp])
    n = jnp.tanh(gi0[:, 2 * Hp:3 * Hp] + r * b_hn)
    h = (1.0 - z) * n
    h_all_ref[pl.ds(0, Bp), :] = h

    # t >= 1: one fused (Bp, Hp) @ (Hp, 3*Hp) matmul per step. W_hh is read through
    # the ref each step (no big value hoist -> no vreg spills on the serial path).
    for t in range(1, S):         # fully unrolled: S is small & static here
        gh = jnp.dot(h, whh_ref[...], preferred_element_type=jnp.float32)
        gi_t = gi_ref[pl.ds(t * Bp, Bp), :]
        r = jax.nn.sigmoid(gi_t[:, 0:Hp] + gh[:, 0:Hp])
        z = jax.nn.sigmoid(gi_t[:, Hp:2 * Hp] + gh[:, Hp:2 * Hp])
        n = jnp.tanh(gi_t[:, 2 * Hp:3 * Hp] + r * (gh[:, 2 * Hp:3 * Hp] + b_hn))
        h = (1.0 - z) * n + z * h
        h_all_ref[pl.ds(t * Bp, Bp), :] = h

    # ---- Phase 3: deferred fc1 + leaky_relu, one matmul + one lane-dense store ----
    y = jnp.dot(h_all_ref[...].astype(matmul_dtype),
                wfc_ref[...].astype(matmul_dtype),
                preferred_element_type=jnp.float32) + bfc_ref[...]
    out_ref[...] = jnp.where(y >= 0.0, y, 0.01 * y)


def init_params(key, n_nodes, hidden_dim):
    """Deterministic parameter init mirroring torch.nn.GRU / nn.Linear shapes."""
    k = jax.random.split(key, 6)
    bound_gru = 1.0 / math.sqrt(hidden_dim)
    bound_fc = 1.0 / math.sqrt(hidden_dim)   # fc1 in_features = hidden_dim
    u = lambda kk, shape, b: jax.random.uniform(kk, shape, jnp.float32, -b, b)
    return {
        "w_ih": u(k[0], (3 * hidden_dim, n_nodes), bound_gru),
        "w_hh": u(k[1], (3 * hidden_dim, hidden_dim), bound_gru),
        "b_ih": u(k[2], (3 * hidden_dim,), bound_gru),
        "b_hh": u(k[3], (3 * hidden_dim,), bound_gru),
        "w_fc": u(k[4], (n_nodes, hidden_dim), bound_fc),
        "b_fc": u(k[5], (n_nodes,), bound_fc),
    }


def prt_layer_forward(x, params, *, matmul_dtype=jnp.float32):
    """x: (B, N, N) float32 -> (B, N, N) float32 (same as the PyTorch return)."""
    B, N, N2 = x.shape
    assert N == N2, "input must be square along axes 1 and 2"
    H = params["w_hh"].shape[1]
    S = N

    # Lane / sublane padding so every in-kernel op is full-lane and 8-sublane aligned.
    Bp = _round_up(B, 8)
    Np = _round_up(N, 128)
    Hp = _round_up(H, 128)

    # seq-major, padded input: (S*Bp, Np); row i = (t = i // Bp, b = i % Bp).
    x_seq = jnp.transpose(x, (1, 0, 2)).astype(jnp.float32)
    x_seq = jnp.pad(x_seq, ((0, 0), (0, Bp - B), (0, Np - N)))
    x_seq = x_seq.reshape(S * Bp, Np)

    w_ih, w_hh = params["w_ih"], params["w_hh"]          # (3H, N), (3H, H)
    b_ih, b_hh = params["b_ih"], params["b_hh"]          # (3H,),   (3H,)

    def pad2(w, rows, cols):
        return jnp.pad(w.astype(jnp.float32),
                       ((0, rows - w.shape[0]), (0, cols - w.shape[1])))

    def pad1(v, n):
        return jnp.pad(v.astype(jnp.float32), (0, n - v.shape[0]))

    # Per-gate (PyTorch order r, z, n), pre-transposed, zero-padded, lane-concatenated.
    wih_cat = jnp.concatenate(
        [pad2(w_ih[g * H:(g + 1) * H].T, Np, Hp) for g in range(3)], axis=1)  # (Np, 3Hp)
    whh_cat = jnp.concatenate(
        [pad2(w_hh[g * H:(g + 1) * H].T, Hp, Hp) for g in range(3)], axis=1)  # (Hp, 3Hp)

    # Fold biases: r/z always see b_ih + b_hh; the n-gate hidden bias stays separate
    # (it is multiplied by r). Padded hidden lanes get zero bias so they stay zero.
    b_r = pad1(b_ih[0:H] + b_hh[0:H], Hp)
    b_z = pad1(b_ih[H:2 * H] + b_hh[H:2 * H], Hp)
    b_in = pad1(b_ih[2 * H:3 * H], Hp)
    b_i_cat = jnp.concatenate([b_r, b_z, b_in]).reshape(1, 3 * Hp)
    b_hn = pad1(b_hh[2 * H:3 * H], Hp).reshape(1, Hp)

    wfc = pad2(params["w_fc"].T, Hp, Np)                 # (Hp, Np)
    bfc = pad1(params["b_fc"], Np).reshape(1, Np)        # (1, Np)

    kernel = functools.partial(_prt_kernel, batch_p=Bp, hidden_p=Hp,
                               matmul_dtype=matmul_dtype)

    out2d = pl.pallas_call(
        kernel,
        out_shape=jax.ShapeDtypeStruct((S * Bp, Np), jnp.float32),
        in_specs=[pl.BlockSpec(memory_space=pltpu.MemorySpace.VMEM)] * 7,
        out_specs=pl.BlockSpec(memory_space=pltpu.MemorySpace.VMEM),
        scratch_shapes=[
            pltpu.VMEM((S * Bp, 3 * Hp), jnp.float32),   # gi (fused r|z|n)
            pltpu.VMEM((S * Bp, Hp), jnp.float32),       # h_all
        ],
    )(x_seq, wih_cat, whh_cat, b_i_cat, b_hn, wfc, bfc)

    # Strip padding, back to (B, N, N).
    out = out2d.reshape(S, Bp, Np)[:, :B, :N]
    return jnp.transpose(out, (1, 0, 2))


def prt_layer_ref(x, params):
    """Pure-JAX reference (mirrors torch.nn.GRU + Linear + leaky_relu)."""
    B, N, _ = x.shape
    H = params["w_hh"].shape[1]
    w_ih, w_hh = params["w_ih"], params["w_hh"]
    b_ih, b_hh = params["b_ih"], params["b_hh"]
    x_seq = jnp.transpose(x, (1, 0, 2))
    h0 = jnp.zeros((B, H), jnp.float32)

    def step(h, x_t):
        gi = x_t @ w_ih.T + b_ih
        gh = h @ w_hh.T + b_hh
        r = jax.nn.sigmoid(gi[:, :H] + gh[:, :H])
        z = jax.nn.sigmoid(gi[:, H:2 * H] + gh[:, H:2 * H])
        n = jnp.tanh(gi[:, 2 * H:] + r * gh[:, 2 * H:])
        h_new = (1.0 - z) * n + z * h
        return h_new, h_new

    _, hs = lax.scan(step, h0, x_seq)                 # (N, B, H)
    h = jnp.transpose(hs, (1, 0, 2))                  # (B, N, H)
    y = h @ params["w_fc"].T + params["b_fc"]
    return jnp.where(y >= 0.0, y, 0.01 * y)


if __name__ == "__main__":
    batch, n_nodes, hidden_dim = 2, 8, 32

    key = jax.random.PRNGKey(0)
    k_x, k_p = jax.random.split(key)
    x = jax.random.normal(k_x, (batch, n_nodes, n_nodes), jnp.float32)
    params = init_params(k_p, n_nodes, hidden_dim)

    out = jax.block_until_ready(prt_layer_forward(x, params))
    ref = jax.block_until_ready(prt_layer_ref(x, params))

    assert out.shape == (batch, n_nodes, n_nodes)
    np.testing.assert_allclose(np.asarray(out), np.asarray(ref),
                               rtol=1e-5, atol=1e-5)
    print("KERNEL_OK")
</pallas_src>

<mosaic_0001>
module attributes {stable_mosaic.version = 11 : i64} {
  func.func @_prt_kernel(%arg0: memref<64x128xf32, #tpu.memory_space<vmem>>, %arg1: memref<128x384xf32, #tpu.memory_space<vmem>>, %arg2: memref<128x384xf32, #tpu.memory_space<vmem>>, %arg3: memref<1x384xf32, #tpu.memory_space<vmem>>, %arg4: memref<1x128xf32, #tpu.memory_space<vmem>>, %arg5: memref<128x128xf32, #tpu.memory_space<vmem>>, %arg6: memref<1x128xf32, #tpu.memory_space<vmem>>, %arg7: memref<64x128xf32, #tpu.memory_space<vmem>>, %arg8: memref<64x384xf32, #tpu.memory_space<vmem>>, %arg9: memref<64x128xf32, #tpu.memory_space<vmem>>) attributes {dimension_semantics = [], scalar_prefetch = 0 : i64, scratch_operands = 2 : i64, tpu.core_type = #tpu.core_type<tc>} {
    %c0 = arith.constant 0 : index
    %c0_0 = arith.constant 0 : index
    %0 = vector.load %arg0[%c0, %c0_0] : memref<64x128xf32, #tpu.memory_space<vmem>>, vector<64x128xf32>
    %c0_1 = arith.constant 0 : index
    %c0_2 = arith.constant 0 : index
    %1 = vector.load %arg1[%c0_1, %c0_2] : memref<128x384xf32, #tpu.memory_space<vmem>>, vector<128x384xf32>
    %cst = arith.constant dense<0.000000e+00> : vector<64x384xf32>
    %2 = tpu.matmul %0, %1, %cst {dimension_numbers = #tpu.dot_dimension_numbers<[1], [0], [0], [1], [0, 0, 1, 1], [], []>} : vector<64x128xf32>, vector<128x384xf32>, vector<64x384xf32> -> vector<64x384xf32>
    %c0_3 = arith.constant 0 : index
    %c0_4 = arith.constant 0 : index
    %3 = vector.load %arg3[%c0_3, %c0_4] : memref<1x384xf32, #tpu.memory_space<vmem>>, vector<1x384xf32>
    %4 = vector.broadcast %3 : vector<1x384xf32> to vector<64x384xf32>
    %5 = arith.addf %2, %4 : vector<64x384xf32>
    %c0_5 = arith.constant 0 : index
    %c0_6 = arith.constant 0 : index
    %6 = vector.load %arg8[%c0_5, %c0_6] : memref<64x384xf32, #tpu.memory_space<vmem>>, vector<64x384xf32>
    tpu.vector_store %arg8[%c0_5, %c0_6], %5 {strides = array<i32>} : memref<64x384xf32, #tpu.memory_space<vmem>>, vector<64x384xf32>,
    %c0_7 = arith.constant 0 : index
    %c0_8 = arith.constant 0 : index
    %7 = vector.load %arg4[%c0_7, %c0_8] : memref<1x128xf32, #tpu.memory_space<vmem>>, vector<1x128xf32>
    %c0_9 = arith.constant 0 : index
    %c0_10 = arith.constant 0 : index
    %8 = vector.load %arg8[%c0_9, %c0_10] : memref<64x384xf32, #tpu.memory_space<vmem>>, vector<8x384xf32>
    %9 = vector.extract_strided_slice %8 {offsets = [0, 0], sizes = [8, 128], strides = [1, 1]} : vector<8x384xf32> to vector<8x128xf32>
    %10 = arith.negf %9 : vector<8x128xf32>
    %11 = math.exp %10 : vector<8x128xf32>
    %cst_11 = arith.constant 1.000000e+00 : f32
    %12 = vector.broadcast %cst_11 : f32 to vector<8x128xf32>
    %13 = arith.addf %12, %11 : vector<8x128xf32>
    %14 = arith.divf %12, %13 : vector<8x128xf32>
    %15 = vector.extract_strided_slice %8 {offsets = [0, 128], sizes = [8, 128], strides = [1, 1]} : vector<8x384xf32> to vector<8x128xf32>
    %16 = arith.negf %15 : vector<8x128xf32>
    %17 = math.exp %16 : vector<8x128xf32>
    %cst_12 = arith.constant 1.000000e+00 : f32
    %18 = vector.broadcast %cst_12 : f32 to vector<8x128xf32>
    %19 = arith.addf %18, %17 : vector<8x128xf32>
    %20 = arith.divf %18, %19 : vector<8x128xf32>
    %21 = vector.extract_strided_slice %8 {offsets = [0, 256], sizes = [8, 128], strides = [1, 1]} : vector<8x384xf32> to vector<8x128xf32>
    %22 = vector.broadcast %7 : vector<1x128xf32> to vector<8x128xf32>
    %23 = arith.mulf %14, %22 : vector<8x128xf32>
    %24 = arith.addf %21, %23 : vector<8x128xf32>
    %25 = math.tanh %24 : vector<8x128xf32>
    %cst_13 = arith.constant 1.000000e+00 : f32
    %26 = vector.broadcast %cst_13 : f32 to vector<8x128xf32>
    %27 = arith.subf %26, %20 : vector<8x128xf32>
    %28 = arith.mulf %27, %25 : vector<8x128xf32>
    %c0_14 = arith.constant 0 : index
    %c0_15 = arith.constant 0 : index
    %29 = vector.load %arg9[%c0_14, %c0_15] : memref<64x128xf32, #tpu.memory_space<vmem>>, vector<8x128xf32>
    tpu.vector_store %arg9[%c0_14, %c0_15], %28 {strides = array<i32>} : memref<64x128xf32, #tpu.memory_space<vmem>>, vector<8x128xf32>,
    %c0_16 = arith.constant 0 : index
    %c0_17 = arith.constant 0 : index
    %30 = vector.load %arg2[%c0_16, %c0_17] : memref<128x384xf32, #tpu.memory_space<vmem>>, vector<128x384xf32>
    %cst_18 = arith.constant dense<0.000000e+00> : vector<8x384xf32>
    %31 = tpu.matmul %28, %30, %cst_18 {dimension_numbers = #tpu.dot_dimension_numbers<[1], [0], [0], [1], [0, 0, 1, 1], [], []>} : vector<8x128xf32>, vector<128x384xf32>, vector<8x384xf32> -> vector<8x384xf32>
    %c8 = arith.constant 8 : index
    %c0_19 = arith.constant 0 : index
    %32 = vector.load %arg8[%c8, %c0_19] : memref<64x384xf32, #tpu.memory_space<vmem>>, vector<8x384xf32>
    %33 = vector.extract_strided_slice %32 {offsets = [0, 0], sizes = [8, 128], strides = [1, 1]} : vector<8x384xf32> to vector<8x128xf32>
    %34 = vector.extract_strided_slice %31 {offsets = [0, 0], sizes = [8, 128], strides = [1, 1]} : vector<8x384xf32> to vector<8x128xf32>
    %35 = arith.addf %33, %34 : vector<8x128xf32>
    %36 = arith.negf %35 : vector<8x128xf32>
    %37 = math.exp %36 : vector<8x128xf32>
    %cst_20 = arith.constant 1.000000e+00 : f32
    %38 = vector.broadcast %cst_20 : f32 to vector<8x128xf32>
    %39 = arith.addf %38, %37 : vector<8x128xf32>
    %40 = arith.divf %38, %39 : vector<8x128xf32>
    %41 = vector.extract_strided_slice %32 {offsets = [0, 128], sizes = [8, 128], strides = [1, 1]} : vector<8x384xf32> to vector<8x128xf32>
    %42 = vector.extract_strided_slice %31 {offsets = [0, 128], sizes = [8, 128], strides = [1, 1]} : vector<8x384xf32> to vector<8x128xf32>
    %43 = arith.addf %41, %42 : vector<8x128xf32>
    %44 = arith.negf %43 : vector<8x128xf32>
    %45 = math.exp %44 : vector<8x128xf32>
    %cst_21 = arith.constant 1.000000e+00 : f32
    %46 = vector.broadcast %cst_21 : f32 to vector<8x128xf32>
    %47 = arith.addf %46, %45 : vector<8x128xf32>
    %48 = arith.divf %46, %47 : vector<8x128xf32>
    %49 = vector.extract_strided_slice %32 {offsets = [0, 256], sizes = [8, 128], strides = [1, 1]} : vector<8x384xf32> to vector<8x128xf32>
    %50 = vector.extract_strided_slice %31 {offsets = [0, 256], sizes = [8, 128], strides = [1, 1]} : vector<8x384xf32> to vector<8x128xf32>
    %51 = vector.broadcast %7 : vector<1x128xf32> to vector<8x128xf32>
    %52 = arith.addf %50, %51 : vector<8x128xf32>
    %53 = arith.mulf %40, %52 : vector<8x128xf32>
    %54 = arith.addf %49, %53 : vector<8x128xf32>
    %55 = math.tanh %54 : vector<8x128xf32>
    %cst_22 = arith.constant 1.000000e+00 : f32
    %56 = vector.broadcast %cst_22 : f32 to vector<8x128xf32>
    %57 = arith.subf %56, %48 : vector<8x128xf32>
    %58 = arith.mulf %57, %55 : vector<8x128xf32>
    %59 = arith.mulf %48, %28 : vector<8x128xf32>
    %60 = arith.addf %58, %59 : vector<8x128xf32>
    %c8_23 = arith.constant 8 : index
    %c0_24 = arith.constant 0 : index
    %61 = vector.load %arg9[%c8_23, %c0_24] : memref<64x128xf32, #tpu.memory_space<vmem>>, vector<8x128xf32>
    tpu.vector_store %arg9[%c8_23, %c0_24], %60 {strides = array<i32>} : memref<64x128xf32, #tpu.memory_space<vmem>>, vector<8x128xf32>,
    %c0_25 = arith.constant 0 : index
    %c0_26 = arith.constant 0 : index
    %62 = vector.load %arg2[%c0_25, %c0_26] : memref<128x384xf32, #tpu.memory_space<vmem>>, vector<128x384xf32>
    %cst_27 = arith.constant dense<0.000000e+00> : vector<8x384xf32>
    %63 = tpu.matmul %60, %62, %cst_27 {dimension_numbers = #tpu.dot_dimension_numbers<[1], [0], [0], [1], [0, 0, 1, 1], [], []>} : vector<8x128xf32>, vector<128x384xf32>, vector<8x384xf32> -> vector<8x384xf32>
    %c16 = arith.constant 16 : index
    %c0_28 = arith.constant 0 : index
    %64 = vector.load %arg8[%c16, %c0_28] : memref<64x384xf32, #tpu.memory_space<vmem>>, vector<8x384xf32>
    %65 = vector.extract_strided_slice %64 {offsets = [0, 0], sizes = [8, 128], strides = [1, 1]} : vector<8x384xf32> to vector<8x128xf32>
    %66 = vector.extract_strided_slice %63 {offsets = [0, 0], sizes = [8, 128], strides = [1, 1]} : vector<8x384xf32> to vector<8x128xf32>
    %67 = arith.addf %65, %66 : vector<8x128xf32>
    %68 = arith.negf %67 : vector<8x128xf32>
    %69 = math.exp %68 : vector<8x128xf32>
    %cst_29 = arith.constant 1.000000e+00 : f32
    %70 = vector.broadcast %cst_29 : f32 to vector<8x128xf32>
    %71 = arith.addf %70, %69 : vector<8x128xf32>
    %72 = arith.divf %70, %71 : vector<8x128xf32>
    %73 = vector.extract_strided_slice %64 {offsets = [0, 128], sizes = [8, 128], strides = [1, 1]} : vector<8x384xf32> to vector<8x128xf32>
    %74 = vector.extract_strided_slice %63 {offsets = [0, 128], sizes = [8, 128], strides = [1, 1]} : vector<8x384xf32> to vector<8x128xf32>
    %75 = arith.addf %73, %74 : vector<8x128xf32>
    %76 = arith.negf %75 : vector<8x128xf32>
    %77 = math.exp %76 : vector<8x128xf32>
    %cst_30 = arith.constant 1.000000e+00 : f32
    %78 = vector.broadcast %cst_30 : f32 to vector<8x128xf32>
    %79 = arith.addf %78, %77 : vector<8x128xf32>
    %80 = arith.divf %78, %79 : vector<8x128xf32>
    %81 = vector.extract_strided_slice %64 {offsets = [0, 256], sizes = [8, 128], strides = [1, 1]} : vector<8x384xf32> to vector<8x128xf32>
    %82 = vector.extract_strided_slice %63 {offsets = [0, 256], sizes = [8, 128], strides = [1, 1]} : vector<8x384xf32> to vector<8x128xf32>
    %83 = vector.broadcast %7 : vector<1x128xf32> to vector<8x128xf32>
    %84 = arith.addf %82, %83 : vector<8x128xf32>
    %85 = arith.mulf %72, %84 : vector<8x128xf32>
    %86 = arith.addf %81, %85 : vector<8x128xf32>
    %87 = math.tanh %86 : vector<8x128xf32>
    %cst_31 = arith.constant 1.000000e+00 : f32
    %88 = vector.broadcast %cst_31 : f32 to vector<8x128xf32>
    %89 = arith.subf %88, %80 : vector<8x128xf32>
    %90 = arith.mulf %89, %87 : vector<8x128xf32>
    %91 = arith.mulf %80, %60 : vector<8x128xf32>
    %92 = arith.addf %90, %91 : vector<8x128xf32>
    %c16_32 = arith.constant 16 : index
    %c0_33 = arith.constant 0 : index
    %93 = vector.load %arg9[%c16_32, %c0_33] : memref<64x128xf32, #tpu.memory_space<vmem>>, vector<8x128xf32>
    tpu.vector_store %arg9[%c16_32, %c0_33], %92 {strides = array<i32>} : memref<64x128xf32, #tpu.memory_space<vmem>>, vector<8x128xf32>,
    %c0_34 = arith.constant 0 : index
    %c0_35 = arith.constant 0 : index
    %94 = vector.load %arg2[%c0_34, %c0_35] : memref<128x384xf32, #tpu.memory_space<vmem>>, vector<128x384xf32>
    %cst_36 = arith.constant dense<0.000000e+00> : vector<8x384xf32>
    %95 = tpu.matmul %92, %94, %cst_36 {dimension_numbers = #tpu.dot_dimension_numbers<[1], [0], [0], [1], [0, 0, 1, 1], [], []>} : vector<8x128xf32>, vector<128x384xf32>, vector<8x384xf32> -> vector<8x384xf32>
    %c24 = arith.constant 24 : index
    %c0_37 = arith.constant 0 : index
    %96 = vector.load %arg8[%c24, %c0_37] : memref<64x384xf32, #tpu.memory_space<vmem>>, vector<8x384xf32>
    %97 = vector.extract_strided_slice %96 {offsets = [0, 0], sizes = [8, 128], strides = [1, 1]} : vector<8x384xf32> to vector<8x128xf32>
    %98 = vector.extract_strided_slice %95 {offsets = [0, 0], sizes = [8, 128], strides = [1, 1]} : vector<8x384xf32> to vector<8x128xf32>
    %99 = arith.addf %97, %98 : vector<8x128xf32>
    %100 = arith.negf %99 : vector<8x128xf32>
    %101 = math.exp %100 : vector<8x128xf32>
    %cst_38 = arith.constant 1.000000e+00 : f32
    %102 = vector.broadcast %cst_38 : f32 to vector<8x128xf32>
    %103 = arith.addf %102, %101 : vector<8x128xf32>
    %104 = arith.divf %102, %103 : vector<8x128xf32>
    %105 = vector.extract_strided_slice %96 {offsets = [0, 128], sizes = [8, 128], strides = [1, 1]} : vector<8x384xf32> to vector<8x128xf32>
    %106 = vector.extract_strided_slice %95 {offsets = [0, 128], sizes = [8, 128], strides = [1, 1]} : vector<8x384xf32> to vector<8x128xf32>
    %107 = arith.addf %105, %106 : vector<8x128xf32>
    %108 = arith.negf %107 : vector<8x128xf32>
    %109 = math.exp %108 : vector<8x128xf32>
    %cst_39 = arith.constant 1.000000e+00 : f32
    %110 = vector.broadcast %cst_39 : f32 to vector<8x128xf32>
    %111 = arith.addf %110, %109 : vector<8x128xf32>
    %112 = arith.divf %110, %111 : vector<8x128xf32>
    %113 = vector.extract_strided_slice %96 {offsets = [0, 256], sizes = [8, 128], strides = [1, 1]} : vector<8x384xf32> to vector<8x128xf32>
    %114 = vector.extract_strided_slice %95 {offsets = [0, 256], sizes = [8, 128], strides = [1, 1]} : vector<8x384xf32> to vector<8x128xf32>
    %115 = vector.broadcast %7 : vector<1x128xf32> to vector<8x128xf32>
    %116 = arith.addf %114, %115 : vector<8x128xf32>
    %117 = arith.mulf %104, %116 : vector<8x128xf32>
    %118 = arith.addf %113, %117 : vector<8x128xf32>
    %119 = math.tanh %118 : vector<8x128xf32>
    %cst_40 = arith.constant 1.000000e+00 : f32
    %120 = vector.broadcast %cst_40 : f32 to vector<8x128xf32>
    %121 = arith.subf %120, %112 : vector<8x128xf32>
    %122 = arith.mulf %121, %119 : vector<8x128xf32>
    %123 = arith.mulf %112, %92 : vector<8x128xf32>
    %124 = arith.addf %122, %123 : vector<8x128xf32>
    %c24_41 = arith.constant 24 : index
    %c0_42 = arith.constant 0 : index
    %125 = vector.load %arg9[%c24_41, %c0_42] : memref<64x128xf32, #tpu.memory_space<vmem>>, vector<8x128xf32>
    tpu.vector_store %arg9[%c24_41, %c0_42], %124 {strides = array<i32>} : memref<64x128xf32, #tpu.memory_space<vmem>>, vector<8x128xf32>,
    %c0_43 = arith.constant 0 : index
    %c0_44 = arith.constant 0 : index
    %126 = vector.load %arg2[%c0_43, %c0_44] : memref<128x384xf32, #tpu.memory_space<vmem>>, vector<128x384xf32>
    %cst_45 = arith.constant dense<0.000000e+00> : vector<8x384xf32>
    %127 = tpu.matmul %124, %126, %cst_45 {dimension_numbers = #tpu.dot_dimension_numbers<[1], [0], [0], [1], [0, 0, 1, 1], [], []>} : vector<8x128xf32>, vector<128x384xf32>, vector<8x384xf32> -> vector<8x384xf32>
    %c32 = arith.constant 32 : index
    %c0_46 = arith.constant 0 : index
    %128 = vector.load %arg8[%c32, %c0_46] : memref<64x384xf32, #tpu.memory_space<vmem>>, vector<8x384xf32>
    %129 = vector.extract_strided_slice %128 {offsets = [0, 0], sizes = [8, 128], strides = [1, 1]} : vector<8x384xf32> to vector<8x128xf32>
    %130 = vector.extract_strided_slice %127 {offsets = [0, 0], sizes = [8, 128], strides = [1, 1]} : vector<8x384xf32> to vector<8x128xf32>
    %131 = arith.addf %129, %130 : vector<8x128xf32>
    %132 = arith.negf %131 : vector<8x128xf32>
    %133 = math.exp %132 : vector<8x128xf32>
    %cst_47 = arith.constant 1.000000e+00 : f32
    %134 = vector.broadcast %cst_47 : f32 to vector<8x128xf32>
    %135 = arith.addf %134, %133 : vector<8x128xf32>
    %136 = arith.divf %134, %135 : vector<8x128xf32>
    %137 = vector.extract_strided_slice %128 {offsets = [0, 128], sizes = [8, 128], strides = [1, 1]} : vector<8x384xf32> to vector<8x128xf32>
    %138 = vector.extract_strided_slice %127 {offsets = [0, 128], sizes = [8, 128], strides = [1, 1]} : vector<8x384xf32> to vector<8x128xf32>
    %139 = arith.addf %137, %138 : vector<8x128xf32>
    %140 = arith.negf %139 : vector<8x128xf32>
    %141 = math.exp %140 : vector<8x128xf32>
    %cst_48 = arith.constant 1.000000e+00 : f32
    %142 = vector.broadcast %cst_48 : f32 to vector<8x128xf32>
    %143 = arith.addf %142, %141 : vector<8x128xf32>
    %144 = arith.divf %142, %143 : vector<8x128xf32>
    %145 = vector.extract_strided_slice %128 {offsets = [0, 256], sizes = [8, 128], strides = [1, 1]} : vector<8x384xf32> to vector<8x128xf32>
    %146 = vector.extract_strided_slice %127 {offsets = [0, 256], sizes = [8, 128], strides = [1, 1]} : vector<8x384xf32> to vector<8x128xf32>
    %147 = vector.broadcast %7 : vector<1x128xf32> to vector<8x128xf32>
    %148 = arith.addf %146, %147 : vector<8x128xf32>
    %149 = arith.mulf %136, %148 : vector<8x128xf32>
    %150 = arith.addf %145, %149 : vector<8x128xf32>
    %151 = math.tanh %150 : vector<8x128xf32>
    %cst_49 = arith.constant 1.000000e+00 : f32
    %152 = vector.broadcast %cst_49 : f32 to vector<8x128xf32>
    %153 = arith.subf %152, %144 : vector<8x128xf32>
    %154 = arith.mulf %153, %151 : vector<8x128xf32>
    %155 = arith.mulf %144, %124 : vector<8x128xf32>
    %156 = arith.addf %154, %155 : vector<8x128xf32>
    %c32_50 = arith.constant 32 : index
    %c0_51 = arith.constant 0 : index
    %157 = vector.load %arg9[%c32_50, %c0_51] : memref<64x128xf32, #tpu.memory_space<vmem>>, vector<8x128xf32>
    tpu.vector_store %arg9[%c32_50, %c0_51], %156 {strides = array<i32>} : memref<64x128xf32, #tpu.memory_space<vmem>>, vector<8x128xf32>,
    %c0_52 = arith.constant 0 : index
    %c0_53 = arith.constant 0 : index
    %158 = vector.load %arg2[%c0_52, %c0_53] : memref<128x384xf32, #tpu.memory_space<vmem>>, vector<128x384xf32>
    %cst_54 = arith.constant dense<0.000000e+00> : vector<8x384xf32>
    %159 = tpu.matmul %156, %158, %cst_54 {dimension_numbers = #tpu.dot_dimension_numbers<[1], [0], [0], [1], [0, 0, 1, 1], [], []>} : vector<8x128xf32>, vector<128x384xf32>, vector<8x384xf32> -> vector<8x384xf32>
    %c40 = arith.constant 40 : index
    %c0_55 = arith.constant 0 : index
    %160 = vector.load %arg8[%c40, %c0_55] : memref<64x384xf32, #tpu.memory_space<vmem>>, vector<8x384xf32>
    %161 = vector.extract_strided_slice %160 {offsets = [0, 0], sizes = [8, 128], strides = [1, 1]} : vector<8x384xf32> to vector<8x128xf32>
    %162 = vector.extract_strided_slice %159 {offsets = [0, 0], sizes = [8, 128], strides = [1, 1]} : vector<8x384xf32> to vector<8x128xf32>
    %163 = arith.addf %161, %162 : vector<8x128xf32>
    %164 = arith.negf %163 : vector<8x128xf32>
    %165 = math.exp %164 : vector<8x128xf32>
    %cst_56 = arith.constant 1.000000e+00 : f32
    %166 = vector.broadcast %cst_56 : f32 to vector<8x128xf32>
    %167 = arith.addf %166, %165 : vector<8x128xf32>
    %168 = arith.divf %166, %167 : vector<8x128xf32>
    %169 = vector.extract_strided_slice %160 {offsets = [0, 128], sizes = [8, 128], strides = [1, 1]} : vector<8x384xf32> to vector<8x128xf32>
    %170 = vector.extract_strided_slice %159 {offsets = [0, 128], sizes = [8, 128], strides = [1, 1]} : vector<8x384xf32> to vector<8x128xf32>
    %171 = arith.addf %169, %170 : vector<8x128xf32>
    %172 = arith.negf %171 : vector<8x128xf32>
    %173 = math.exp %172 : vector<8x128xf32>
    %cst_57 = arith.constant 1.000000e+00 : f32
    %174 = vector.broadcast %cst_57 : f32 to vector<8x128xf32>
    %175 = arith.addf %174, %173 : vector<8x128xf32>
    %176 = arith.divf %174, %175 : vector<8x128xf32>
    %177 = vector.extract_strided_slice %160 {offsets = [0, 256], sizes = [8, 128], strides = [1, 1]} : vector<8x384xf32> to vector<8x128xf32>
    %178 = vector.extract_strided_slice %159 {offsets = [0, 256], sizes = [8, 128], strides = [1, 1]} : vector<8x384xf32> to vector<8x128xf32>
    %179 = vector.broadcast %7 : vector<1x128xf32> to vector<8x128xf32>
    %180 = arith.addf %178, %179 : vector<8x128xf32>
    %181 = arith.mulf %168, %180 : vector<8x128xf32>
    %182 = arith.addf %177, %181 : vector<8x128xf32>
    %183 = math.tanh %182 : vector<8x128xf32>
    %cst_58 = arith.constant 1.000000e+00 : f32
    %184 = vector.broadcast %cst_58 : f32 to vector<8x128xf32>
    %185 = arith.subf %184, %176 : vector<8x128xf32>
    %186 = arith.mulf %185, %183 : vector<8x128xf32>
    %187 = arith.mulf %176, %156 : vector<8x128xf32>
    %188 = arith.addf %186, %187 : vector<8x128xf32>
    %c40_59 = arith.constant 40 : index
    %c0_60 = arith.constant 0 : index
    %189 = vector.load %arg9[%c40_59, %c0_60] : memref<64x128xf32, #tpu.memory_space<vmem>>, vector<8x128xf32>
    tpu.vector_store %arg9[%c40_59, %c0_60], %188 {strides = array<i32>} : memref<64x128xf32, #tpu.memory_space<vmem>>, vector<8x128xf32>,
    %c0_61 = arith.constant 0 : index
    %c0_62 = arith.constant 0 : index
    %190 = vector.load %arg2[%c0_61, %c0_62] : memref<128x384xf32, #tpu.memory_space<vmem>>, vector<128x384xf32>
    %cst_63 = arith.constant dense<0.000000e+00> : vector<8x384xf32>
    %191 = tpu.matmul %188, %190, %cst_63 {dimension_numbers = #tpu.dot_dimension_numbers<[1], [0], [0], [1], [0, 0, 1, 1], [], []>} : vector<8x128xf32>, vector<128x384xf32>, vector<8x384xf32> -> vector<8x384xf32>
    %c48 = arith.constant 48 : index
    %c0_64 = arith.constant 0 : index
    %192 = vector.load %arg8[%c48, %c0_64] : memref<64x384xf32, #tpu.memory_space<vmem>>, vector<8x384xf32>
    %193 = vector.extract_strided_slice %192 {offsets = [0, 0], sizes = [8, 128], strides = [1, 1]} : vector<8x384xf32> to vector<8x128xf32>
    %194 = vector.extract_strided_slice %191 {offsets = [0, 0], sizes = [8, 128], strides = [1, 1]} : vector<8x384xf32> to vector<8x128xf32>
    %195 = arith.addf %193, %194 : vector<8x128xf32>
    %196 = arith.negf %195 : vector<8x128xf32>
    %197 = math.exp %196 : vector<8x128xf32>
    %cst_65 = arith.constant 1.000000e+00 : f32
    %198 = vector.broadcast %cst_65 : f32 to vector<8x128xf32>
    %199 = arith.addf %198, %197 : vector<8x128xf32>
    %200 = arith.divf %198, %199 : vector<8x128xf32>
    %201 = vector.extract_strided_slice %192 {offsets = [0, 128], sizes = [8, 128], strides = [1, 1]} : vector<8x384xf32> to vector<8x128xf32>
    %202 = vector.extract_strided_slice %191 {offsets = [0, 128], sizes = [8, 128], strides = [1, 1]} : vector<8x384xf32> to vector<8x128xf32>
    %203 = arith.addf %201, %202 : vector<8x128xf32>
    %204 = arith.negf %203 : vector<8x128xf32>
    %205 = math.exp %204 : vector<8x128xf32>
    %cst_66 = arith.constant 1.000000e+00 : f32
    %206 = vector.broadcast %cst_66 : f32 to vector<8x128xf32>
    %207 = arith.addf %206, %205 : vector<8x128xf32>
    %208 = arith.divf %206, %207 : vector<8x128xf32>
    %209 = vector.extract_strided_slice %192 {offsets = [0, 256], sizes = [8, 128], strides = [1, 1]} : vector<8x384xf32> to vector<8x128xf32>
    %210 = vector.extract_strided_slice %191 {offsets = [0, 256], sizes = [8, 128], strides = [1, 1]} : vector<8x384xf32> to vector<8x128xf32>
    %211 = vector.broadcast %7 : vector<1x128xf32> to vector<8x128xf32>
    %212 = arith.addf %210, %211 : vector<8x128xf32>
    %213 = arith.mulf %200, %212 : vector<8x128xf32>
    %214 = arith.addf %209, %213 : vector<8x128xf32>
    %215 = math.tanh %214 : vector<8x128xf32>
    %cst_67 = arith.constant 1.000000e+00 : f32
    %216 = vector.broadcast %cst_67 : f32 to vector<8x128xf32>
    %217 = arith.subf %216, %208 : vector<8x128xf32>
    %218 = arith.mulf %217, %215 : vector<8x128xf32>
    %219 = arith.mulf %208, %188 : vector<8x128xf32>
    %220 = arith.addf %218, %219 : vector<8x128xf32>
    %c48_68 = arith.constant 48 : index
    %c0_69 = arith.constant 0 : index
    %221 = vector.load %arg9[%c48_68, %c0_69] : memref<64x128xf32, #tpu.memory_space<vmem>>, vector<8x128xf32>
    tpu.vector_store %arg9[%c48_68, %c0_69], %220 {strides = array<i32>} : memref<64x128xf32, #tpu.memory_space<vmem>>, vector<8x128xf32>,
    %c0_70 = arith.constant 0 : index
    %c0_71 = arith.constant 0 : index
    %222 = vector.load %arg2[%c0_70, %c0_71] : memref<128x384xf32, #tpu.memory_space<vmem>>, vector<128x384xf32>
    %cst_72 = arith.constant dense<0.000000e+00> : vector<8x384xf32>
    %223 = tpu.matmul %220, %222, %cst_72 {dimension_numbers = #tpu.dot_dimension_numbers<[1], [0], [0], [1], [0, 0, 1, 1], [], []>} : vector<8x128xf32>, vector<128x384xf32>, vector<8x384xf32> -> vector<8x384xf32>
    %c56 = arith.constant 56 : index
    %c0_73 = arith.constant 0 : index
    %224 = vector.load %arg8[%c56, %c0_73] : memref<64x384xf32, #tpu.memory_space<vmem>>, vector<8x384xf32>
    %225 = vector.extract_strided_slice %224 {offsets = [0, 0], sizes = [8, 128], strides = [1, 1]} : vector<8x384xf32> to vector<8x128xf32>
    %226 = vector.extract_strided_slice %223 {offsets = [0, 0], sizes = [8, 128], strides = [1, 1]} : vector<8x384xf32> to vector<8x128xf32>
    %227 = arith.addf %225, %226 : vector<8x128xf32>
    %228 = arith.negf %227 : vector<8x128xf32>
    %229 = math.exp %228 : vector<8x128xf32>
    %cst_74 = arith.constant 1.000000e+00 : f32
    %230 = vector.broadcast %cst_74 : f32 to vector<8x128xf32>
    %231 = arith.addf %230, %229 : vector<8x128xf32>
    %232 = arith.divf %230, %231 : vector<8x128xf32>
    %233 = vector.extract_strided_slice %224 {offsets = [0, 128], sizes = [8, 128], strides = [1, 1]} : vector<8x384xf32> to vector<8x128xf32>
    %234 = vector.extract_strided_slice %223 {offsets = [0, 128], sizes = [8, 128], strides = [1, 1]} : vector<8x384xf32> to vector<8x128xf32>
    %235 = arith.addf %233, %234 : vector<8x128xf32>
    %236 = arith.negf %235 : vector<8x128xf32>
    %237 = math.exp %236 : vector<8x128xf32>
    %cst_75 = arith.constant 1.000000e+00 : f32
    %238 = vector.broadcast %cst_75 : f32 to vector<8x128xf32>
    %239 = arith.addf %238, %237 : vector<8x128xf32>
    %240 = arith.divf %238, %239 : vector<8x128xf32>
    %241 = vector.extract_strided_slice %224 {offsets = [0, 256], sizes = [8, 128], strides = [1, 1]} : vector<8x384xf32> to vector<8x128xf32>
    %242 = vector.extract_strided_slice %223 {offsets = [0, 256], sizes = [8, 128], strides = [1, 1]} : vector<8x384xf32> to vector<8x128xf32>
    %243 = vector.broadcast %7 : vector<1x128xf32> to vector<8x128xf32>
    %244 = arith.addf %242, %243 : vector<8x128xf32>
    %245 = arith.mulf %232, %244 : vector<8x128xf32>
    %246 = arith.addf %241, %245 : vector<8x128xf32>
    %247 = math.tanh %246 : vector<8x128xf32>
    %cst_76 = arith.constant 1.000000e+00 : f32
    %248 = vector.broadcast %cst_76 : f32 to vector<8x128xf32>
    %249 = arith.subf %248, %240 : vector<8x128xf32>
    %250 = arith.mulf %249, %247 : vector<8x128xf32>
    %251 = arith.mulf %240, %220 : vector<8x128xf32>
    %252 = arith.addf %250, %251 : vector<8x128xf32>
    %c56_77 = arith.constant 56 : index
    %c0_78 = arith.constant 0 : index
    %253 = vector.load %arg9[%c56_77, %c0_78] : memref<64x128xf32, #tpu.memory_space<vmem>>, vector<8x128xf32>
    tpu.vector_store %arg9[%c56_77, %c0_78], %252 {strides = array<i32>} : memref<64x128xf32, #tpu.memory_space<vmem>>, vector<8x128xf32>,
    %c0_79 = arith.constant 0 : index
    %c0_80 = arith.constant 0 : index
    %254 = vector.load %arg9[%c0_79, %c0_80] : memref<64x128xf32, #tpu.memory_space<vmem>>, vector<64x128xf32>
    %c0_81 = arith.constant 0 : index
    %c0_82 = arith.constant 0 : index
    %255 = vector.load %arg5[%c0_81, %c0_82] : memref<128x128xf32, #tpu.memory_space<vmem>>, vector<128x128xf32>
    %cst_83 = arith.constant dense<0.000000e+00> : vector<64x128xf32>
    %256 = tpu.matmul %254, %255, %cst_83 {dimension_numbers = #tpu.dot_dimension_numbers<[1], [0], [0], [1], [0, 0, 1, 1], [], []>} : vector<64x128xf32>, vector<128x128xf32>, vector<64x128xf32> -> vector<64x128xf32>
    %c0_84 = arith.constant 0 : index
    %c0_85 = arith.constant 0 : index
    %257 = vector.load %arg6[%c0_84, %c0_85] : memref<1x128xf32, #tpu.memory_space<vmem>>, vector<1x128xf32>
    %258 = vector.broadcast %257 : vector<1x128xf32> to vector<64x128xf32>
    %259 = arith.addf %256, %258 : vector<64x128xf32>
    %cst_86 = arith.constant 0.000000e+00 : f32
    %260 = vector.broadcast %cst_86 : f32 to vector<64x128xf32>
    %261 = arith.cmpf oge, %259, %260 : vector<64x128xf32>
    %cst_87 = arith.constant 0.00999999977 : f32
    %262 = vector.broadcast %cst_87 : f32 to vector<64x128xf32>
    %263 = arith.mulf %262, %259 : vector<64x128xf32>
    %264 = arith.select %261, %259, %263 : vector<64x128xi1>, vector<64x128xf32>
    %c0_88 = arith.constant 0 : index
    %c0_89 = arith.constant 0 : index
    %265 = vector.load %arg7[%c0_88, %c0_89] : memref<64x128xf32, #tpu.memory_space<vmem>>, vector<64x128xf32>
    tpu.vector_store %arg7[%c0_88, %c0_89], %264 {strides = array<i32>} : memref<64x128xf32, #tpu.memory_space<vmem>>, vector<64x128xf32>,
    return
  }
}

</mosaic_0001>

<bundles_post_ra>
// kernel: tpu_custom_call.1
= control target key start
LH: loop header
LB: loop body
LE: loop exit
PB: predicated region body
PF: predicated region fallthrough
CT: control target
= control target key end

     0   :  { %12 = vsyncpa [#allocation5], 0  ;;  %s2590_s0 = inlined_call_operand.hbm [shape: f32[64,128], index: 0, kind: input, shape index: {}]   ;;  %s2591_s1 = inlined_call_operand.hbm [shape: f32[128,384], index: 1, kind: input, shape index: {}]   ;;  %s2592_s2 = inlined_call_operand.hbm [shape: f32[128,384], index: 2, kind: input, shape index: {}]   ;;  %s2593_s3 = inlined_call_operand.hbm [shape: f32[1,384], index: 3, kind: input, shape index: {}]   ;;  %s2594_s4 = inlined_call_operand.vmem [shape: f32[1,128], index: 4, kind: input, shape index: {}]   ;;  %s2595_s5 = inlined_call_operand.hbm [shape: f32[128,128], index: 5, kind: input, shape index: {}]   ;;  %s2596_s6 = inlined_call_operand.vmem [shape: f32[1,128], index: 6, kind: input, shape index: {}]   ;;  %s2597_s7 = inlined_call_operand.hbm [shape: f32[64,128], index: 7, kind: output, shape index: {}]  }
   0x1   :  { %13 = vsyncpa [#allocation8], 0 }
   0x2   :  { %14 = vsyncpa [#allocation11], 0  ;;  %s33_s26 = sshll.u32 %s2591_s1, 4  ;;  %s34_s26 = int_to_ptr.hbm [resolvable:$true] %s33_s26 }
   0x3   :  { %15 = vsyncpa [#allocation6], 0  ;;  %s1868_s27 = smov [#allocation7]   ;;  %s60_s8 = sshll.u32 %s2593_s3, 4  ;;  %s61_s8 = int_to_ptr.hbm [resolvable:$true] %s60_s8 }
   0x4   :  { %s35_s28 = sshll.u32 %s1868_s27, 4  ;;  %s1869_s9 = smov 384   ;;  %s36_s28 = int_to_ptr.vmem [resolvable:$true] %s35_s28 }
   0x5   :  { %s1870_s10 = smov 24   ;;  %s1871_s11 = smov [#allocation10]  }
   0x6   :  { %41 = dma.hbm_to_vmem [thread:$0]  %s34_s26, 6144, %s36_s28, [#allocation8], %s1869_s9, %s1869_s9, %s1870_s10  }
   0x7   :  { %s62_s12 = sshll.u32 %s1871_s11, 4  ;;  %s20_s15 = sshll.u32 %s2590_s0, 4  ;;  %s63_s12 = int_to_ptr.vmem [resolvable:$true] %s62_s12  ;;  %s21_s15 = int_to_ptr.hbm [resolvable:$true] %s20_s15 }
   0x8   :  { %65 = dma.hbm_to_vmem [thread:$0]  %s61_s8, 48, %s63_s12, [#allocation11]  }
   0x9   :  { %s1872_s1 = smov [#allocation4]   ;;  %s46_s3 = sshll.u32 %s2592_s2, 4  ;;  %s47_s3 = int_to_ptr.hbm [resolvable:$true] %s46_s3 }
   0xa   :  { %s22_s16 = sshll.u32 %s1872_s1, 4  ;;  %s1873_s19 = smov 128   ;;  %s23_s16 = int_to_ptr.vmem [resolvable:$true] %s22_s16 }
   0xb   :  { %s1874_s20 = smov 8   ;;  %s1875_s21 = smov [#allocation9]  }
   0xc   :  { %28 = dma.hbm_to_vmem [thread:$0]  %s21_s15, 1024, %s23_s16, [#allocation5], %s1873_s19, %s1873_s19, %s1874_s20  }
   0xd   :  { %s48_s22 = sshll.u32 %s1875_s21, 4  ;;  %s72_s24 = sshll.u32 %s2595_s5, 4  ;;  %s49_s22 = int_to_ptr.vmem [resolvable:$true] %s48_s22  ;;  %s73_s24 = int_to_ptr.hbm [resolvable:$true] %s72_s24 }
   0xe   :  { %54 = dma.hbm_to_vmem [thread:$0]  %s47_s3, 6144, %s49_s22, [#allocation8], %s1869_s9, %s1869_s9, %s1870_s10  }
   0xf   :  { %s1876_s25 = smov [#allocation12]  }
  0x10   :  { %s74_s26 = sshll.u32 %s1876_s25, 4  ;;  %s75_s26 = int_to_ptr.vmem [resolvable:$true] %s74_s26 }
  0x11   :  { %80 = dma.hbm_to_vmem [thread:$0]  %s73_s24, 2048, %s75_s26, [#allocation11], %s1873_s19, %s1873_s19, %s1874_s20  }
  0x12   :  { %1860 = dma.done.wait [#allocation5], 1024  }
  0x13   :  { %1861 = vsyncadd [#allocation5], 4294966272 }
  0x14   :  { %1862 = dma.done.wait [#allocation8], 12288  }
  0x15   :  { %1863 = vsyncadd [#allocation8], 4294955008 }
  0x16   :  { %1864 = dma.done.wait [#allocation11], 2096  }
  0x17   :  { %1865 = vsyncadd [#allocation11], 4294965200  ;;  %v156_v0 = vld [vmem:[#allocation7 + $0x168] sm:$0xff]  ;;  %v157_v1 = vld [vmem:[#allocation7 + $0x170] sm:$0xff]  ;;  %s1592_s10 = sshll.u32 %s2597_s7, 4  ;;  %s1593_s10 = int_to_ptr.hbm [resolvable:$true] %s1592_s10 }
  0x18   :  { %v153_v2 = vld [vmem:[#allocation7 + $0x150] sm:$0xff]  ;;  %167 = vmatpush.msra.mxu0 %v156_v0  ;;  %208 = vmatpush.msra.mxu1 %v157_v1  ;;  %v154_v3 = vld [vmem:[#allocation7 + $0x158] sm:$0xff]  ;;  %v151_v5 = vld [vmem:[#allocation7 + $0x140] sm:$0xff] }
  0x19   :  { %v150_v4 = vld [vmem:[#allocation7 + $0x138] sm:$0xff]  ;;  %v147_v6 = vld [vmem:[#allocation7 + $0x120] sm:$0xff]  ;;  %v148_v7 = vld [vmem:[#allocation7 + $0x128] sm:$0xff] }
  0x1a   :  { %168 = vmatpush.msra.mxu0 %v153_v2  ;;  %209 = vmatpush.msra.mxu1 %v154_v3  ;;  %v144_v8 = vld [vmem:[#allocation7 + $0x108] sm:$0xff]  ;;  %v145_v9 = vld [vmem:[#allocation7 + $0x110] sm:$0xff]  ;;  %v142_v11 = vld [vmem:[#allocation7 + $0xf8] sm:$0xff] }
  0x1b   :  { %v141_v10 = vld [vmem:[#allocation7 + $0xf0] sm:$0xff]  ;;  %v158_v12 = vld [vmem:[#allocation7 + $0x178] sm:$0xff]  ;;  %v155_v13 = vld [vmem:[#allocation7 + $0x160] sm:$0xff] }
  0x1c   :  { %169 = vmatpush.msra.mxu0 %v150_v4  ;;  %210 = vmatpush.msra.mxu1 %v151_v5  ;;  %v138_v14 = vld [vmem:[#allocation7 + $0xd8] sm:$0xff]  ;;  %v139_v15 = vld [vmem:[#allocation7 + $0xe0] sm:$0xff]  ;;  %v152_v16 = vld [vmem:[#allocation7 + $0x148] sm:$0xff] }
  0x1d   :  { %249 = vmatpush.msra.mxu2 %v158_v12  ;;  %v135_v17 = vld [vmem:[#allocation7 + $0xc0] sm:$0xff]  ;;  %v136_v18 = vld [vmem:[#allocation7 + $0xc8] sm:$0xff]  ;;  %v149_v19 = vld [vmem:[#allocation7 + $0x130] sm:$0xff] }
  0x1e   :  { %170 = vmatpush.msra.mxu0 %v147_v6  ;;  %211 = vmatpush.msra.mxu1 %v148_v7  ;;  %v132_v20 = vld [vmem:[#allocation7 + $0xa8] sm:$0xff]  ;;  %v133_v21 = vld [vmem:[#allocation7 + $0xb0] sm:$0xff]  ;;  %v146_v22 = vld [vmem:[#allocation7 + $0x118] sm:$0xff] }
  0x1f   :  { %250 = vmatpush.msra.mxu2 %v155_v13  ;;  %v129_v23 = vld [vmem:[#allocation7 + $0x90] sm:$0xff]  ;;  %v130_v24 = vld [vmem:[#allocation7 + $0x98] sm:$0xff]  ;;  %v143_v25 = vld [vmem:[#allocation7 + $0x100] sm:$0xff] }
  0x20   :  { %171 = vmatpush.msra.mxu0 %v144_v8  ;;  %212 = vmatpush.msra.mxu1 %v145_v9  ;;  %v126_v26 = vld [vmem:[#allocation7 + $0x78] sm:$0xff]  ;;  %v127_v27 = vld [vmem:[#allocation7 + $0x80] sm:$0xff]  ;;  %v140_v28 = vld [vmem:[#allocation7 + $0xe8] sm:$0xff] }
  0x21   :  { %251 = vmatpush.msra.mxu2 %v152_v16  ;;  %v123_v29 = vld [vmem:[#allocation7 + $0x60] sm:$0xff]  ;;  %v124_v30 = vld [vmem:[#allocation7 + $0x68] sm:$0xff]  ;;  %v137_v31 = vld [vmem:[#allocation7 + $0xd0] sm:$0xff] }
  0x22   :  { %172 = vmatpush.msra.mxu0 %v141_v10  ;;  %213 = vmatpush.msra.mxu1 %v142_v11  ;;  %v120_v32 = vld [vmem:[#allocation7 + $0x48] sm:$0xff]  ;;  %v121_v33 = vld [vmem:[#allocation7 + $0x50] sm:$0xff]  ;;  %v134_v34 = vld [vmem:[#allocation7 + $0xb8] sm:$0xff] }
  0x23   :  { %252 = vmatpush.msra.mxu2 %v149_v19  ;;  %v117_v35 = vld [vmem:[#allocation7 + $0x30] sm:$0xff]  ;;  %v118_v36 = vld [vmem:[#allocation7 + $0x38] sm:$0xff]  ;;  %v131_v37 = vld [vmem:[#allocation7 + $0xa0] sm:$0xff] }
  0x24   :  { %173 = vmatpush.msra.mxu0 %v138_v14  ;;  %214 = vmatpush.msra.mxu1 %v139_v15  ;;  %v114_v38 = vld [vmem:[#allocation7 + $0x18] sm:$0xff]  ;;  %v115_v39 = vld [vmem:[#allocation7 + $0x20] sm:$0xff]  ;;  %v128_v40 = vld [vmem:[#allocation7 + $0x88] sm:$0xff] }
  0x25   :  { %253 = vmatpush.msra.mxu2 %v146_v22  ;;  %v111_v41 = vld [vmem:[#allocation7] sm:$0xff]  ;;  %v112_v42 = vld [vmem:[#allocation7 + $0x8] sm:$0xff]  ;;  %v125_v44 = vld [vmem:[#allocation7 + $0x70] sm:$0xff] }
  0x26   :  { %174 = vmatpush.msra.mxu0 %v135_v17  ;;  %215 = vmatpush.msra.mxu1 %v136_v18  ;;  %v103_v43 = vld [vmem:[#allocation4] sm:$0xff]  ;;  %v1939_v45 = vld [vmem:[#allocation9 + $0x168] sm:$0xff]  ;;  %v122_v46 = vld [vmem:[#allocation7 + $0x58] sm:$0xff] }
  0x27   :  { %254 = vmatpush.msra.mxu2 %v143_v25  ;;  %v1941_v47 = vld [vmem:[#allocation9 + $0x150] sm:$0xff]  ;;  %v119_v48 = vld [vmem:[#allocation7 + $0x40] sm:$0xff]  ;;  %v1944_v49 = vld [vmem:[#allocation9 + $0x138] sm:$0xff] }
  0x28   :  { %175 = vmatpush.msra.mxu0 %v132_v20  ;;  %216 = vmatpush.msra.mxu1 %v133_v21  ;;  %v116_v50 = vld [vmem:[#allocation7 + $0x28] sm:$0xff]  ;;  %v1948_v51 = vld [vmem:[#allocation9 + $0x120] sm:$0xff]  ;;  %v113_v53 = vld [vmem:[#allocation7 + $0x10] sm:$0xff] }
  0x29   :  { %255 = vmatpush.msra.mxu2 %v140_v28  ;;  %v104_v52 = vld [vmem:[#allocation4 + $0x8] sm:$0xff]  ;;  %v105_v55 = vld [vmem:[#allocation4 + $0x10] sm:$0xff]  ;;  %v1963_v57 = vld [vmem:[#allocation9 + $0xd8] sm:$0xff] }
  0x2a   :  { %176 = vmatpush.msra.mxu0 %v129_v23  ;;  %217 = vmatpush.msra.mxu1 %v130_v24  ;;  %v1952_v54 = vld [vmem:[#allocation9 + $0x108] sm:$0xff]  ;;  %v1959_v56 = vld [vmem:[#allocation9 + $0xf0] sm:$0xff]  ;;  %v106_v58 = vld [vmem:[#allocation4 + $0x18] sm:$0xff] }
  0x2b   :  { %256 = vmatpush.msra.mxu2 %v137_v31  ;;  %v1967_v59 = vld [vmem:[#allocation9 + $0xc0] sm:$0xff]  ;;  %v1970_v60 = vld [vmem:[#allocation9 + $0xa8] sm:$0xff]  ;;  %v1974_v61 = vld [vmem:[#allocation9 + $0x90] sm:$0xff] }
  0x2c   :  { %177 = vmatpush.msra.mxu0 %v126_v26  ;;  %218 = vmatpush.msra.mxu1 %v127_v27  ;;  %v1978_v62 = vld [vmem:[#allocation9 + $0x78] sm:$0xff]  ;;  %v107_v63 = vld [vmem:[#allocation4 + $0x20] sm:$0xff]  ;;  %v1984_v1 = vld [vmem:[#allocation9 + $0x170] sm:$0xff] }
  0x2d   :  { %257 = vmatpush.msra.mxu2 %v134_v34  ;;  %v1982_v0 = vld [vmem:[#allocation9 + $0x60] sm:$0xff]  ;;  %433 = vmatpush.msra.mxu3 %v1984_v1  ;;  %v1988_v2 = vld [vmem:[#allocation9 + $0x48] sm:$0xff]  ;;  %v1990_v3 = vld [vmem:[#allocation9 + $0x158] sm:$0xff] }
  0x2e   :  { %178 = vmatpush.msra.mxu0 %v123_v29  ;;  %219 = vmatpush.msra.mxu1 %v124_v30  ;;  %v1996_v4 = vld [vmem:[#allocation9 + $0x30] sm:$0xff]  ;;  %v1998_v5 = vld [vmem:[#allocation9 + $0x140] sm:$0xff]  ;;  %v2004_v6 = vld [vmem:[#allocation9 + $0x18] sm:$0xff] }
  0x2f   :  { %258 = vmatpush.msra.mxu2 %v131_v37  ;;  %434 = vmatpush.msra.mxu3 %v1990_v3  ;;  %v2006_v7 = vld [vmem:[#allocation9 + $0x128] sm:$0xff]  ;;  %v2012_v9 = vld [vmem:[#allocation9] sm:$0xff]  ;;  %v2014_v10 = vld [vmem:[#allocation9 + $0x110] sm:$0xff] }
  0x30   :  { %179 = vmatpush.msra.mxu0 %v120_v32  ;;  %220 = vmatpush.msra.mxu1 %v121_v33  ;;  %v108_v8 = vld [vmem:[#allocation4 + $0x28] sm:$0xff]  ;;  %v2016_v11 = vld [vmem:[#allocation9 + $0x178] sm:$0xff]  ;;  %v2024_v13 = vld [vmem:[#allocation9 + $0x160] sm:$0xff] }
  0x31   :  { %259 = vmatpush.msra.mxu2 %v128_v40  ;;  %435 = vmatpush.msra.mxu3 %v1998_v5  ;;  %v2022_v12 = vld [vmem:[#allocation9 + $0xf8] sm:$0xff]  ;;  %v2029_v14 = vld [vmem:[#allocation9 + $0xe0] sm:$0xff]  ;;  %v2031_v15 = vld [vmem:[#allocation9 + $0x148] sm:$0xff] }
  0x32   :  { %180 = vmatpush.msra.mxu0 %v117_v35  ;;  %221 = vmatpush.msra.mxu1 %v118_v36  ;;  %2599 = vst [vmem:[#allocation18_spill] sm:$0xff] %v2031_v15  ;;  %v2034_v16 = vld [vmem:[#allocation10] sm:$0x7]  ;;  %v2037_v17 = vld [vmem:[#allocation9 + $0xc8] sm:$0xff]  ;;  %v2039_v18 = vld [vmem:[#allocation9 + $0x130] sm:$0xff] }
  0x33   :  { %260 = vmatpush.msra.mxu2 %v125_v44  ;;  %436 = vmatpush.msra.mxu3 %v2006_v7  ;;  %v109_v19 = vld [vmem:[#allocation4 + $0x30] sm:$0xff]  ;;  %v2046_v21 = vld [vmem:[#allocation9 + $0x118] sm:$0xff]  ;;  %v2050_v22 = vperm.slane %v2034_v16, 0  ;;  %v2053_v23 = vperm.slane %v2034_v16, 1  ;;  %v2061_v25 = vld [vmem:[#allocation9 + $0x100] sm:$0xff] }
  0x34   :  { %181 = vmatpush.msra.mxu0 %v114_v38  ;;  %222 = vmatpush.msra.mxu1 %v115_v39  ;;  %v2042_v20 = vld [vmem:[#allocation9 + $0xb0] sm:$0xff]  ;;  %v2059_v24 = vld [vmem:[#allocation9 + $0x98] sm:$0xff]  ;;  %v2068_v30 = vld [vmem:[#allocation9 + $0x80] sm:$0xff] }
  0x35   :  { %261 = vmatpush.msra.mxu2 %v122_v46  ;;  %437 = vmatpush.msra.mxu3 %v2014_v10  ;;  %v2070_v31 = vld [vmem:[#allocation9 + $0xe8] sm:$0xff]  ;;  %v2077_v35 = vld [vmem:[#allocation9 + $0xd0] sm:$0xff]  ;;  %v110_v36 = vld [vmem:[#allocation4 + $0x38] sm:$0xff] }
  0x36   :  { %182 = vmatpush.msra.mxu0 %v111_v41  ;;  %223 = vmatpush.msra.mxu1 %v112_v42  ;;  %v2075_v34 = vld [vmem:[#allocation9 + $0x68] sm:$0xff]  ;;  %v2083_v37 = vld [vmem:[#allocation9 + $0x50] sm:$0xff]  ;;  %v2085_v38 = vld [vmem:[#allocation9 + $0xb8] sm:$0xff] }
  0x37   :  { %183 = vmatmul.f32.vlgmr.msra.gmra.mxu0 %v103_v43  ;;  %224 = vmatmul.f32.vlgmr.msra.gmra.mxu1 %v103_v43  ;;  %v2090_v39 = vld [vmem:[#allocation9 + $0x38] sm:$0xff]  ;;  %v2092_v40 = vld [vmem:[#allocation9 + $0xa0] sm:$0xff]  ;;  %v2099_v42 = vld [vmem:[#allocation9 + $0x88] sm:$0xff] }
  0x38   :  { %413 = vmatpush.msrb.mxu0 %v1939_v45  ;;  %573 = vmatpush.msrb.mxu1 %v1939_v45  ;;  %v2097_v41 = vld [vmem:[#allocation9 + $0x20] sm:$0xff]  ;;  %v2105_v44 = vld [vmem:[#allocation9 + $0x70] sm:$0xff] }
  0x39   :  { %262 = vmatpush.msra.mxu2 %v119_v48  ;;  %438 = vmatpush.msra.mxu3 %v2022_v12 }
  0x3a   :  { %414 = vmatpush.msrb.mxu0 %v1941_v47  ;;  %574 = vmatpush.msrb.mxu1 %v1941_v47 }
  0x3b   :  { %263 = vmatpush.msra.mxu2 %v116_v50  ;;  %439 = vmatpush.msra.mxu3 %v2029_v14 }
  0x3c   :  { %415 = vmatpush.msrb.mxu0 %v1944_v49  ;;  %575 = vmatpush.msrb.mxu1 %v1944_v49 }
  0x3d   :  { %264 = vmatpush.msra.mxu2 %v113_v53  ;;  %440 = vmatpush.msra.mxu3 %v2037_v17 }
  0x3e   :  { %416 = vmatpush.msrb.mxu0 %v1948_v51  ;;  %265 = vmatmul.f32.vlgmr.msra.gmra.mxu2 %v103_v43  ;;  %v2103_v43 = vld [vmem:[#allocation9 + $0x8] sm:$0xff] }
  0x3f   :  { %186 = vmatmul.f32.gmra.mxu0 %v104_v52  ;;  %227 = vmatmul.f32.gmra.mxu1 %v104_v52 }
  0x40   :  { %417 = vmatpush.msrb.mxu0 %v1952_v54  ;;  %576 = vmatpush.msrb.mxu1 %v1948_v51 }
  0x41   :  { %593 = vmatpush.msrb.mxu2 %v1984_v1  ;;  %441 = vmatpush.msra.mxu3 %v2042_v20 }
  0x42   :  { %577 = vmatpush.msrb.mxu1 %v1952_v54  ;;  %418 = vmatpush.msrb.mxu0 %v1959_v56 }
  0x43   :  { %594 = vmatpush.msrb.mxu2 %v1990_v3  ;;  %442 = vmatpush.msra.mxu3 %v2059_v24 }
  0x44   :  { %578 = vmatpush.msrb.mxu1 %v1959_v56  ;;  %419 = vmatpush.msrb.mxu0 %v1963_v57 }
  0x45   :  { %595 = vmatpush.msrb.mxu2 %v1998_v5  ;;  %443 = vmatpush.msra.mxu3 %v2068_v30 }
  0x46   :  { %268 = vmatmul.f32.gmra.mxu2 %v104_v52  ;;  %579 = vmatpush.msrb.mxu1 %v1963_v57  ;;  %v2110_v52 = vld [vmem:[#allocation9 + $0x58] sm:$0xff] }
  0x47   :  { %189 = vmatmul.f32.gmra.mxu0 %v105_v55  ;;  %230 = vmatmul.f32.gmra.mxu1 %v105_v55 }
  0x48   :  { %420 = vmatpush.msrb.mxu0 %v1967_v59  ;;  %580 = vmatpush.msrb.mxu1 %v1967_v59 }
  0x49   :  { %596 = vmatpush.msrb.mxu2 %v2006_v7  ;;  %444 = vmatpush.msra.mxu3 %v2075_v34 }
  0x4a   :  { %421 = vmatpush.msrb.mxu0 %v1970_v60  ;;  %581 = vmatpush.msrb.mxu1 %v1970_v60 }
  0x4b   :  { %597 = vmatpush.msrb.mxu2 %v2014_v10  ;;  %445 = vmatpush.msra.mxu3 %v2083_v37 }
  0x4c   :  { %422 = vmatpush.msrb.mxu0 %v1974_v61  ;;  %582 = vmatpush.msrb.mxu1 %v1974_v61 }
  0x4d   :  { %598 = vmatpush.msrb.mxu2 %v2022_v12  ;;  %446 = vmatpush.msra.mxu3 %v2090_v39 }
  0x4e   :  { %271 = vmatmul.f32.gmra.mxu2 %v105_v55  ;;  %423 = vmatpush.msrb.mxu0 %v1978_v62  ;;  %v2117_v55 = vld [vmem:[#allocation9 + $0x40] sm:$0xff] }
  0x4f   :  { %192 = vmatmul.f32.gmra.mxu0 %v106_v58  ;;  %233 = vmatmul.f32.gmra.mxu1 %v106_v58 }
  0x50   :  { %424 = vmatpush.msrb.mxu0 %v1982_v0  ;;  %583 = vmatpush.msrb.mxu1 %v1978_v62 }
  0x51   :  { %599 = vmatpush.msrb.mxu2 %v2029_v14  ;;  %447 = vmatpush.msra.mxu3 %v2097_v41 }
  0x52   :  { %425 = vmatpush.msrb.mxu0 %v1988_v2  ;;  %584 = vmatpush.msrb.mxu1 %v1982_v0 }
  0x53   :  { %600 = vmatpush.msrb.mxu2 %v2037_v17  ;;  %448 = vmatpush.msra.mxu3 %v2103_v43 }
  0x54   :  { %426 = vmatpush.msrb.mxu0 %v1996_v4  ;;  %585 = vmatpush.msrb.mxu1 %v1988_v2 }
  0x55   :  { %601 = vmatpush.msrb.mxu2 %v2042_v20  ;;  %613 = vmatpush.msrb.mxu3 %v2016_v11 }
  0x56   :  { %274 = vmatmul.f32.gmra.mxu2 %v106_v58  ;;  %427 = vmatpush.msrb.mxu0 %v2004_v6  ;;  %v2124_v58 = vld [vmem:[#allocation9 + $0x28] sm:$0xff] }
  0x57   :  { %195 = vmatmul.f32.gmra.mxu0 %v107_v63  ;;  %236 = vmatmul.f32.gmra.mxu1 %v107_v63 }
  0x58   :  { %428 = vmatpush.msrb.mxu0 %v2012_v9  ;;  %586 = vmatpush.msrb.mxu1 %v1996_v4 }
  0x59   :  { %602 = vmatpush.msrb.mxu2 %v2059_v24  ;;  %614 = vmatpush.msrb.mxu3 %v2024_v13 }
  0x5a   :  { %453 = vmatpush.msra.mxu0 %v2016_v11  ;;  %587 = vmatpush.msrb.mxu1 %v2004_v6 }
  0x5b   :  { %603 = vmatpush.msrb.mxu2 %v2068_v30  ;;  %615 = vmatpush.msrb.mxu3 %v2031_v15 }
  0x5c   :  { %454 = vmatpush.msra.mxu0 %v2024_v13  ;;  %588 = vmatpush.msrb.mxu1 %v2012_v9 }
  0x5d   :  { %604 = vmatpush.msrb.mxu2 %v2075_v34  ;;  %616 = vmatpush.msrb.mxu3 %v2039_v18 }
  0x5e   :  { %277 = vmatmul.f32.gmra.mxu2 %v107_v63  ;;  %455 = vmatpush.msra.mxu0 %v2031_v15  ;;  %v2129_v63 = vld [vmem:[#allocation9 + $0x10] sm:$0xff] }
  0x5f   :  { %198 = vmatmul.f32.gmra.mxu0 %v108_v8  ;;  %239 = vmatmul.f32.gmra.mxu1 %v108_v8 }
  0x60   :  { %456 = vmatpush.msra.mxu0 %v2039_v18  ;;  %605 = vmatpush.msrb.mxu2 %v2083_v37 }
  0x61   :  { %753 = vmatpush.msra.mxu1 %v1984_v1  ;;  %617 = vmatpush.msrb.mxu3 %v2046_v21 }
  0x62   :  { %457 = vmatpush.msra.mxu0 %v2046_v21  ;;  %606 = vmatpush.msrb.mxu2 %v2090_v39 }
  0x63   :  { %754 = vmatpush.msra.mxu1 %v1990_v3  ;;  %618 = vmatpush.msrb.mxu3 %v2061_v25 }
  0x64   :  { %458 = vmatpush.msra.mxu0 %v2061_v25  ;;  %607 = vmatpush.msrb.mxu2 %v2097_v41 }
  0x65   :  { %755 = vmatpush.msra.mxu1 %v1998_v5  ;;  %619 = vmatpush.msrb.mxu3 %v2070_v31 }
  0x66   :  { %280 = vmatmul.f32.gmra.mxu2 %v108_v8  ;;  %459 = vmatpush.msra.mxu0 %v2070_v31 }
  0x67   :  { %201 = vmatmul.f32.gmra.mxu0 %v109_v19  ;;  %242 = vmatmul.f32.gmra.mxu1 %v109_v19 }
  0x68   :  { %460 = vmatpush.msra.mxu0 %v2077_v35  ;;  %608 = vmatpush.msrb.mxu2 %v2103_v43 }
  0x69   :  { %756 = vmatpush.msra.mxu1 %v2006_v7  ;;  %620 = vmatpush.msrb.mxu3 %v2077_v35 }
  0x6a   :  { %461 = vmatpush.msra.mxu0 %v2085_v38  ;;  %773 = vmatpush.msra.mxu2 %v2016_v11 }
  0x6b   :  { %757 = vmatpush.msra.mxu1 %v2014_v10  ;;  %621 = vmatpush.msrb.mxu3 %v2085_v38 }
  0x6c   :  { %462 = vmatpush.msra.mxu0 %v2092_v40  ;;  %774 = vmatpush.msra.mxu2 %v2024_v13 }
  0x6d   :  { %758 = vmatpush.msra.mxu1 %v2022_v12  ;;  %v2154_v12 = vld [vmem:[%s2594_s4] ss:$0 sm:$0xff]  ;;  %622 = vmatpush.msrb.mxu3 %v2092_v40 }
  0x6e   :  { %283 = vmatmul.f32.gmra.mxu2 %v109_v19  ;;  %463 = vmatpush.msra.mxu0 %v2099_v42 }
  0x6f   :  { %204 = vmatmul.f32.gmra.mxu0 %v110_v36  ;;  %245 = vmatmul.f32.gmra.mxu1 %v110_v36 }
  0x70   :  { %464 = vmatpush.msra.mxu0 %v2105_v44  ;;  %775 = vmatpush.msra.mxu2 %v2031_v15 }
  0x71   :  { %759 = vmatpush.msra.mxu1 %v2029_v14  ;;  %623 = vmatpush.msrb.mxu3 %v2099_v42 }
  0x72   :  { %465 = vmatpush.msra.mxu0 %v2110_v52  ;;  %776 = vmatpush.msra.mxu2 %v2039_v18 }
  0x73   :  { %760 = vmatpush.msra.mxu1 %v2037_v17  ;;  %624 = vmatpush.msrb.mxu3 %v2105_v44 }
  0x74   :  { %466 = vmatpush.msra.mxu0 %v2117_v55  ;;  %777 = vmatpush.msra.mxu2 %v2046_v21 }
  0x75   :  { %761 = vmatpush.msra.mxu1 %v2042_v20  ;;  %625 = vmatpush.msrb.mxu3 %v2110_v52 }
  0x76   :  { %286 = vmatmul.f32.gmra.mxu2 %v110_v36  ;;  %467 = vmatpush.msra.mxu0 %v2124_v58 }
  0x77   :  { %778 = vmatpush.msra.mxu2 %v2061_v25  ;;  %762 = vmatpush.msra.mxu1 %v2059_v24 }
  0x78   :  { %468 = vmatpush.msra.mxu0 %v2129_v63  ;;  %626 = vmatpush.msrb.mxu3 %v2117_v55 }
  0x79   :  { %779 = vmatpush.msra.mxu2 %v2070_v31  ;;  %763 = vmatpush.msra.mxu1 %v2068_v30 }
  0x7a   :  { %627 = vmatpush.msrb.mxu3 %v2124_v58 }
  0x7b   :  { %780 = vmatpush.msra.mxu2 %v2077_v35  ;;  %764 = vmatpush.msra.mxu1 %v2075_v34 }
  0x7c   :  { %628 = vmatpush.msrb.mxu3 %v2129_v63 }
  0x7d   :  { %781 = vmatpush.msra.mxu2 %v2085_v38  ;;  %765 = vmatpush.msra.mxu1 %v2083_v37 }
  0x7f   :  { %782 = vmatpush.msra.mxu2 %v2092_v40  ;;  %766 = vmatpush.msra.mxu1 %v2090_v39 }
  0x81   :  { %783 = vmatpush.msra.mxu2 %v2099_v42  ;;  %767 = vmatpush.msra.mxu1 %v2097_v41 }
  0x83   :  { %784 = vmatpush.msra.mxu2 %v2105_v44  ;;  %768 = vmatpush.msra.mxu1 %v2103_v43 }
  0x85   :  { %785 = vmatpush.msra.mxu2 %v2110_v52 }
  0x87   :  { %786 = vmatpush.msra.mxu2 %v2117_v55 }
  0x89   :  { %787 = vmatpush.msra.mxu2 %v2124_v58 }
  0x8b   :  { %788 = vmatpush.msra.mxu2 %v2129_v63 }
  0xb4   :  { %v184_v26 = vpop.f32.mrf.mxu0  ;;  %v225_v27 = vpop.f32.mrf.mxu1 }
  0xb5   :  { %v185_v28 = vadd.f32 %v184_v26, %v2050_v22  ;;  %v226_v29 = vadd.f32 %v225_v27, %v2053_v23 }
  0xb7   :  { %v1607_v32 = vmul.f32 -1.442695, %v185_v28  ;;  %v1608_v33 = vmul.f32 -1.442695, %v226_v29 }
  0xb9   :  { %1635 = vpow2.f32 %v1607_v32 }
  0xba   :  { %1637 = vpow2.f32 %v1608_v33  ;;  %v2146_v33 = vperm.slane %v2034_v16, 2 }
  0xbf   :  { %v1636_v46 = vpop.eup %1635 }
  0xc0   :  { %v1638_v48 = vpop.eup %1637  ;;  %v321_v50 = vadd.f32 1.0, %v1636_v46 }
  0xc1   :  { %v2113_v53 = vadd.f32 1.0, %v1638_v48  ;;  %v266_v15 = vpop.f32.mrf.mxu2 }
  0xc2   :  { %1639 = vrcp.f32 %v321_v50  ;;  %v333_v32 = vand.u32 2147483648, %v321_v50  ;;  %v331_v46 = vand.u32 2147483647, %v321_v50  ;;  %vm327_vm1 = vweird.f32 %v321_v50 }
  0xc3   :  { %1641 = vrcp.f32 %v2113_v53  ;;  %vm346_vm4 = vweird.f32 %v2113_v53 }
  0xc4   :  { %v334_v16 = vor.u32 1.1754944e-38, %v333_v32  ;;  %vm332_vm3 = vcmp.eq.f32.partialorder %v331_v46, 8.507059e+37 }
  0xc8   :  { %v1640_v8 = vpop.eup %1639 }
  0xc9   :  { %v1642_v19 = vpop.eup %1641  ;;  %v323_v26 = vmul.f32 %v1640_v8, %v321_v50  ;;  %vm328_vm0 = vweird.f32 %v1640_v8 }
  0xca   :  { %v342_v27 = vmul.f32 %v1642_v19, %v2113_v53  ;;  %vm329_vm2 = vmor %vm327_vm1, %vm328_vm0  ;;  %vm347_vm5 = vweird.f32 %v1642_v19 }
  0xcb   :  { %v324_v28 = vsub.f32 1.0, %v323_v26  ;;  %vm348_vm6 = vmor %vm346_vm4, %vm347_vm5 }
  0xcc   :  { %v343_v29 = vsub.f32 1.0, %v342_v27  ;;  %v267_v27 = vadd.f32 %v266_v15, %v2146_v33  ;;  %v350_v15 = vand.u32 2147483647, %v2113_v53 }
  0xcd   :  { %v325_v36 = vmul.f32 %v1640_v8, %v324_v28 }
  0xce   :  { %v344_v48 = vmul.f32 %v1642_v19, %v343_v29  ;;  %v352_v29 = vand.u32 2147483648, %v2113_v53  ;;  %vm351_vm7 = vcmp.eq.f32.partialorder %v350_v15, 8.507059e+37 }
  0xcf   :  { %v326_v26 = vadd.f32 %v1640_v8, %v325_v36 }
  0xd0   :  { %v345_v50 = vadd.f32 %v1642_v19, %v344_v48  ;;  %v353_v20 = vor.u32 1.1754944e-38, %v352_v29 }
  0xd1   :  { %v330_v28 = vsel %vm329_vm2, %v1640_v8, %v326_v26 }
  0xd2   :  { %v335_v14 = vsel %vm332_vm3, %v334_v16, %v330_v28  ;;  %v349_v8 = vsel %vm348_vm6, %v1642_v19, %v345_v50 }
  0xd3   :  { %v359_v32 = vmul.f32 %v2154_v12, %v335_v14  ;;  %v354_v53 = vsel %vm351_vm7, %v353_v20, %v349_v8  ;;  %v269_v14 = vpop.f32.mrf.mxu2 }
  0xd4   :  { %v362_v19 = vsub.f32 1.0, %v354_v53  ;;  %v270_v8 = vadd.f32 %v269_v14, %v2146_v33 }
  0xd5   :  { %v360_v17 = vadd.f32 %v359_v32, %v267_v27 }
  0xd7   :  { %1643 = vtanh.f32 %v360_v17 }
  0xdd   :  { %v1644_v36 = vpop.eup %1643 }
  0xde   :  { %v2183_v46 = vmul.f32 %v1644_v36, %v362_v19 }
  0xe0   :  { %429 = vmatmul.f32.vlgmr.msrb.gmra.mxu0 %v2183_v46  ;;  %449 = vmatmul.f32.vlgmr.msra.gmra.mxu3 %v2183_v46 }
  0xe1   :  { %733 = vmatpush.msrb.mxu0 %v1939_v45  ;;  %v187_v45 = vpop.f32.mrf.mxu0 }
  0xe3   :  { %734 = vmatpush.msrb.mxu0 %v1941_v47 }
  0xe5   :  { %735 = vmatpush.msrb.mxu0 %v1944_v49 }
  0xe7   :  { %736 = vmatpush.msrb.mxu0 %v1948_v51 }
  0xe8   :  { %469 = vmatmul.f32.vlgmr.msra.gmra.mxu0 %v2183_v46 }
  0xe9   :  { %737 = vmatpush.msrb.mxu0 %v1952_v54  ;;  %v2216_v47 = vpop.f32.mrf.mxu0 }
  0xeb   :  { %738 = vmatpush.msrb.mxu0 %v1959_v56 }
  0xed   :  { %739 = vmatpush.msrb.mxu0 %v1963_v57 }
  0xef   :  { %740 = vmatpush.msrb.mxu0 %v1967_v59  ;;  %v188_v59 = vadd.f32 %v187_v45, %v2050_v22 }
  0xf1   :  { %741 = vmatpush.msrb.mxu0 %v1970_v60  ;;  %v2218_v49 = vpop.f32.mrf.mxu0 }
  0xf3   :  { %742 = vmatpush.msrb.mxu0 %v1974_v61  ;;  %v228_v61 = vpop.f32.mrf.mxu1 }
  0xf5   :  { %743 = vmatpush.msrb.mxu0 %v1978_v62 }
  0xf7   :  { %744 = vmatpush.msrb.mxu0 %v1982_v0 }
  0xf9   :  { %745 = vmatpush.msrb.mxu0 %v1988_v2  ;;  %v2220_v51 = vpop.f32.mrf.mxu0 }
  0xfb   :  { %746 = vmatpush.msrb.mxu0 %v1996_v4 }
  0xfd   :  { %747 = vmatpush.msrb.mxu0 %v2004_v6 }
  0xff   :  { %748 = vmatpush.msrb.mxu0 %v2012_v9 }
 0x101   :  { %913 = vmatpush.msra.mxu0 %v1984_v1  ;;  %v2222_v54 = vpop.f32.mrf.mxu0  ;;  %v229_v1 = vadd.f32 %v228_v61, %v2053_v23 }
 0x103   :  { %914 = vmatpush.msra.mxu0 %v1990_v3 }
 0x105   :  { %915 = vmatpush.msra.mxu0 %v1998_v5 }
 0x107   :  { %916 = vmatpush.msra.mxu0 %v2006_v7 }
 0x109   :  { %917 = vmatpush.msra.mxu0 %v2014_v10  ;;  %v2224_v56 = vpop.f32.mrf.mxu0 }
 0x111   :  { %v2226_v57 = vpop.f32.mrf.mxu0 }
 0x15d   :  { %v430_v60 = vpop.f32.mrf.mxu0 }
 0x15e   :  { %v476_v62 = vadd.f32 %v430_v60, %v188_v59 }
 0x160   :  { %v1609_v0 = vmul.f32 -1.442695, %v476_v62 }
 0x162   :  { %1645 = vpow2.f32 %v1609_v0 }
 0x163   :  { %v450_v2 = vpop.f32.mrf.mxu3 }
 0x164   :  { %v496_v3 = vadd.f32 %v450_v2, %v229_v1 }
 0x165   :  { %v470_v29 = vpop.f32.mrf.mxu0 }
 0x166   :  { %v1610_v4 = vmul.f32 -1.442695, %v496_v3  ;;  %v516_v19 = vadd.f32 %v2154_v12, %v470_v29 }
 0x168   :  { %v1646_v5 = vpop.eup %1645  ;;  %1647 = vpow2.f32 %v1610_v4 }
 0x169   :  { %v480_v6 = vadd.f32 1.0, %v1646_v5 }
 0x16b   :  { %1649 = vrcp.f32 %v480_v6  ;;  %v492_v16 = vand.u32 2147483648, %v480_v6  ;;  %v490_v28 = vand.u32 2147483647, %v480_v6  ;;  %vm486_vm9 = vweird.f32 %v480_v6 }
 0x16d   :  { %v493_v17 = vor.u32 1.1754944e-38, %v492_v16  ;;  %vm491_vm11 = vcmp.eq.f32.partialorder %v490_v28, 8.507059e+37 }
 0x16e   :  { %v1648_v7 = vpop.eup %1647 }
 0x16f   :  { %v500_v9 = vadd.f32 1.0, %v1648_v7 }
 0x171   :  { %v1650_v10 = vpop.eup %1649  ;;  %1651 = vrcp.f32 %v500_v9  ;;  %v512_v59 = vand.u32 2147483648, %v500_v9  ;;  %v510_v61 = vand.u32 2147483647, %v500_v9  ;;  %vm506_vm13 = vweird.f32 %v500_v9 }
 0x172   :  { %v482_v48 = vmul.f32 %v1650_v10, %v480_v6  ;;  %vm487_vm8 = vweird.f32 %v1650_v10 }
 0x173   :  { %vm488_vm10 = vmor %vm486_vm9, %vm487_vm8  ;;  %v513_v1 = vor.u32 1.1754944e-38, %v512_v59  ;;  %vm511_vm15 = vcmp.eq.f32.partialorder %v510_v61, 8.507059e+37 }
 0x174   :  { %v483_v26 = vsub.f32 1.0, %v482_v48 }
 0x176   :  { %v484_v27 = vmul.f32 %v1650_v10, %v483_v26 }
 0x177   :  { %v1652_v50 = vpop.eup %1651 }
 0x178   :  { %v502_v32 = vmul.f32 %v1652_v50, %v500_v9  ;;  %v485_v15 = vadd.f32 %v1650_v10, %v484_v27  ;;  %vm507_vm12 = vweird.f32 %v1652_v50  ;;  %v2600_v9 = vld [vmem:[#allocation18_spill] sm:$0xff] }
 0x179   :  { %vm508_vm14 = vmor %vm506_vm13, %vm507_vm12 }
 0x17a   :  { %v503_v20 = vsub.f32 1.0, %v502_v32  ;;  %v489_v53 = vsel %vm488_vm10, %v1650_v10, %v485_v15 }
 0x17b   :  { %v494_v36 = vsel %vm491_vm11, %v493_v17, %v489_v53 }
 0x17c   :  { %v504_v45 = vmul.f32 %v1652_v50, %v503_v20  ;;  %v517_v60 = vmul.f32 %v516_v19, %v494_v36 }
 0x17e   :  { %v505_v62 = vadd.f32 %v1652_v50, %v504_v45  ;;  %v518_v0 = vadd.f32 %v517_v60, %v270_v8 }
 0x180   :  { %v509_v2 = vsel %vm508_vm14, %v1652_v50, %v505_v62  ;;  %1653 = vtanh.f32 %v518_v0 }
 0x181   :  { %v514_v3 = vsel %vm511_vm15, %v513_v1, %v509_v2 }
 0x182   :  { %v520_v4 = vsub.f32 1.0, %v514_v3  ;;  %v522_v7 = vmul.f32 %v514_v3, %v2183_v46 }
 0x186   :  { %v1654_v5 = vpop.eup %1653 }
 0x187   :  { %v521_v6 = vmul.f32 %v1654_v5, %v520_v4 }
 0x189   :  { %v2233_v10 = vadd.f32 %v522_v7, %v521_v6 }
 0x18b   :  { %589 = vmatmul.f32.vlgmr.msrb.gmra.mxu1 %v2233_v10  ;;  %609 = vmatmul.f32.vlgmr.msrb.gmra.mxu2 %v2233_v10 }
 0x18c   :  { %629 = vmatmul.f32.vlgmr.msrb.gmra.mxu3 %v2233_v10  ;;  %933 = vmatpush.msrb.mxu1 %v2016_v11  ;;  %v231_v11 = vpop.f32.mrf.mxu1 }
 0x18d   :  { %v232_v26 = vadd.f32 %v231_v11, %v2053_v23 }
 0x18e   :  { %934 = vmatpush.msrb.mxu1 %v2024_v13  ;;  %v272_v13 = vpop.f32.mrf.mxu2 }
 0x18f   :  { %v273_v1 = vadd.f32 %v272_v13, %v2146_v33 }
 0x190   :  { %935 = vmatpush.msrb.mxu1 %v2600_v9 }
 0x192   :  { %936 = vmatpush.msrb.mxu1 %v2039_v18 }
 0x194   :  { %937 = vmatpush.msrb.mxu1 %v2046_v21  ;;  %v2254_v18 = vpop.f32.mrf.mxu1 }
 0x196   :  { %938 = vmatpush.msrb.mxu1 %v2061_v25  ;;  %v2256_v21 = vpop.f32.mrf.mxu2 }
 0x198   :  { %939 = vmatpush.msrb.mxu1 %v2070_v31 }
 0x19a   :  { %940 = vmatpush.msrb.mxu1 %v2077_v35 }
 0x19c   :  { %941 = vmatpush.msrb.mxu1 %v2085_v38  ;;  %v2258_v25 = vpop.f32.mrf.mxu1 }
 0x19e   :  { %942 = vmatpush.msrb.mxu1 %v2092_v40  ;;  %v2260_v31 = vpop.f32.mrf.mxu2 }
 0x1a0   :  { %943 = vmatpush.msrb.mxu1 %v2099_v42 }
 0x1a2   :  { %944 = vmatpush.msrb.mxu1 %v2105_v44 }
 0x1a4   :  { %945 = vmatpush.msrb.mxu1 %v2110_v52  ;;  %v2262_v35 = vpop.f32.mrf.mxu1 }
 0x1a6   :  { %946 = vmatpush.msrb.mxu1 %v2117_v55  ;;  %v2264_v38 = vpop.f32.mrf.mxu2  ;;  %v191_v55 = vadd.f32 %v2216_v47, %v2050_v22 }
 0x1a8   :  { %947 = vmatpush.msrb.mxu1 %v2124_v58 }
 0x1aa   :  { %948 = vmatpush.msrb.mxu1 %v2129_v63 }
 0x1ac   :  { %v2266_v40 = vpop.f32.mrf.mxu1 }
 0x1ae   :  { %v2268_v42 = vpop.f32.mrf.mxu2 }
 0x1b4   :  { %v2270_v44 = vpop.f32.mrf.mxu1 }
 0x1b6   :  { %v2272_v52 = vpop.f32.mrf.mxu2 }
 0x208   :  { %v590_v58 = vpop.f32.mrf.mxu1 }
 0x209   :  { %v636_v63 = vadd.f32 %v590_v58, %v191_v55 }
 0x20b   :  { %v1611_v48 = vmul.f32 -1.442695, %v636_v63 }
 0x20d   :  { %1655 = vpow2.f32 %v1611_v48 }
 0x20e   :  { %v610_v16 = vpop.f32.mrf.mxu2 }
 0x20f   :  { %v656_v27 = vadd.f32 %v610_v16, %v232_v26  ;;  %v630_v36 = vpop.f32.mrf.mxu3 }
 0x210   :  { %v676_v0 = vadd.f32 %v2154_v12, %v630_v36  ;;  %v2336_v36 = vld [vmem:[#allocation9 + $0xa8] sm:$0xff] }
 0x211   :  { %v1612_v28 = vmul.f32 -1.442695, %v656_v27  ;;  %v2285_v27 = vld [vmem:[#allocation9 + $0x168] sm:$0xff] }
 0x212   :  { %893 = vmatpush.msra.mxu3 %v2285_v27  ;;  %1053 = vmatpush.msrb.mxu2 %v2285_v27 }
 0x213   :  { %v1656_v14 = vpop.eup %1655  ;;  %1657 = vpow2.f32 %v1612_v28  ;;  %v2289_v28 = vld [vmem:[#allocation9 + $0x150] sm:$0xff] }
 0x214   :  { %v640_v50 = vadd.f32 1.0, %v1656_v14  ;;  %894 = vmatpush.msra.mxu3 %v2289_v28  ;;  %1054 = vmatpush.msrb.mxu2 %v2289_v28  ;;  %v2294_v14 = vld [vmem:[#allocation9 + $0x138] sm:$0xff] }
 0x216   :  { %1659 = vrcp.f32 %v640_v50  ;;  %v652_v47 = vand.u32 2147483648, %v640_v50  ;;  %v650_v53 = vand.u32 2147483647, %v640_v50  ;;  %vm646_vm1 = vweird.f32 %v640_v50  ;;  %895 = vmatpush.msra.mxu3 %v2294_v14  ;;  %1055 = vmatpush.msrb.mxu2 %v2294_v14 }
 0x218   :  { %v653_v60 = vor.u32 1.1754944e-38, %v652_v47  ;;  %vm651_vm3 = vcmp.eq.f32.partialorder %v650_v53, 8.507059e+37  ;;  %v2324_v47 = vld [vmem:[#allocation9 + $0xc0] sm:$0xff]  ;;  %v194_v53 = vadd.f32 %v2218_v49, %v2050_v22  ;;  %v2344_v49 = vld [vmem:[#allocation9 + $0x90] sm:$0xff] }
 0x219   :  { %v1658_v29 = vpop.eup %1657 }
 0x21a   :  { %v660_v32 = vadd.f32 1.0, %v1658_v29  ;;  %v2304_v29 = vld [vmem:[#allocation9 + $0x108] sm:$0xff] }
 0x21c   :  { %v1660_v15 = vpop.eup %1659  ;;  %1661 = vrcp.f32 %v660_v32  ;;  %v672_v4 = vand.u32 2147483648, %v660_v32  ;;  %v670_v6 = vand.u32 2147483647, %v660_v32  ;;  %vm666_vm5 = vweird.f32 %v660_v32 }
 0x21d   :  { %v642_v17 = vmul.f32 %v1660_v15, %v640_v50  ;;  %vm647_vm0 = vweird.f32 %v1660_v15  ;;  %v2299_v50 = vld [vmem:[#allocation9 + $0x120] sm:$0xff] }
 0x21e   :  { %vm648_vm2 = vmor %vm646_vm1, %vm647_vm0  ;;  %v673_v11 = vor.u32 1.1754944e-38, %v672_v4  ;;  %vm671_vm7 = vcmp.eq.f32.partialorder %v670_v6, 8.507059e+37  ;;  %896 = vmatpush.msra.mxu3 %v2299_v50  ;;  %1056 = vmatpush.msrb.mxu2 %v2299_v50  ;;  %v2376_v4 = vld [vmem:[#allocation9] sm:$0xff] }
 0x21f   :  { %v643_v8 = vsub.f32 1.0, %v642_v17  ;;  %v2316_v17 = vld [vmem:[#allocation9 + $0xd8] sm:$0xff] }
 0x220   :  { %897 = vmatpush.msra.mxu3 %v2304_v29  ;;  %1057 = vmatpush.msrb.mxu2 %v2304_v29 }
 0x221   :  { %v644_v20 = vmul.f32 %v1660_v15, %v643_v8  ;;  %v2318_v8 = vld [vmem:[#allocation9 + $0xe0] sm:$0xff] }
 0x222   :  { %v1662_v19 = vpop.eup %1661 }
 0x223   :  { %v662_v45 = vmul.f32 %v1662_v19, %v660_v32  ;;  %v645_v59 = vadd.f32 %v1660_v15, %v644_v20  ;;  %vm667_vm4 = vweird.f32 %v1662_v19  ;;  %v2309_v32 = vld [vmem:[#allocation9 + $0xf0] sm:$0xff]  ;;  %v2326_v20 = vld [vmem:[#allocation9 + $0xc8] sm:$0xff] }
 0x224   :  { %vm668_vm6 = vmor %vm666_vm5, %vm667_vm4  ;;  %898 = vmatpush.msra.mxu3 %v2309_v32  ;;  %1058 = vmatpush.msrb.mxu2 %v2309_v32 }
 0x225   :  { %v663_v61 = vsub.f32 1.0, %v662_v45  ;;  %v649_v62 = vsel %vm648_vm2, %v1660_v15, %v645_v59  ;;  %v2311_v15 = vld [vmem:[#allocation9 + $0xf8] sm:$0xff]  ;;  %v2338_v45 = vld [vmem:[#allocation9 + $0xb0] sm:$0xff] }
 0x226   :  { %v654_v2 = vsel %vm651_vm3, %v653_v60, %v649_v62  ;;  %918 = vmatpush.msra.mxu0 %v2311_v15  ;;  %899 = vmatpush.msra.mxu3 %v2316_v17 }
 0x227   :  { %v664_v3 = vmul.f32 %v1662_v19, %v663_v61  ;;  %v677_v5 = vmul.f32 %v676_v0, %v654_v2  ;;  %1059 = vmatpush.msrb.mxu2 %v2316_v17  ;;  %v2356_v2 = vld [vmem:[#allocation9 + $0x60] sm:$0xff] }
 0x228   :  { %919 = vmatpush.msra.mxu0 %v2318_v8  ;;  %900 = vmatpush.msra.mxu3 %v2324_v47 }
 0x229   :  { %v665_v7 = vadd.f32 %v1662_v19, %v664_v3  ;;  %v678_v9 = vadd.f32 %v677_v5, %v273_v1  ;;  %1060 = vmatpush.msrb.mxu2 %v2324_v47  ;;  %v2350_v1 = vld [vmem:[#allocation9 + $0x78] sm:$0xff] }
 0x22a   :  { %920 = vmatpush.msra.mxu0 %v2326_v20  ;;  %901 = vmatpush.msra.mxu3 %v2336_v36 }
 0x22b   :  { %v669_v55 = vsel %vm668_vm6, %v1662_v19, %v665_v7  ;;  %1663 = vtanh.f32 %v678_v9  ;;  %v235_v19 = vadd.f32 %v2254_v18, %v2053_v23  ;;  %1061 = vmatpush.msrb.mxu2 %v2336_v36 }
 0x22c   :  { %v674_v58 = vsel %vm671_vm7, %v673_v11, %v669_v55  ;;  %921 = vmatpush.msra.mxu0 %v2338_v45  ;;  %902 = vmatpush.msra.mxu3 %v2344_v49 }
 0x22d   :  { %v680_v63 = vsub.f32 1.0, %v674_v58  ;;  %v682_v13 = vmul.f32 %v674_v58, %v2233_v10  ;;  %1062 = vmatpush.msrb.mxu2 %v2344_v49 }
 0x22e   :  { %922 = vmatpush.msra.mxu0 %v2059_v24  ;;  %903 = vmatpush.msra.mxu3 %v2350_v1  ;;  %v2362_v24 = vld [vmem:[#allocation9 + $0x48] sm:$0xff] }
 0x22f   :  { %1063 = vmatpush.msrb.mxu2 %v2350_v1 }
 0x230   :  { %923 = vmatpush.msra.mxu0 %v2068_v30  ;;  %904 = vmatpush.msra.mxu3 %v2356_v2  ;;  %v2368_v30 = vld [vmem:[#allocation9 + $0x30] sm:$0xff] }
 0x231   :  { %v1664_v48 = vpop.eup %1663  ;;  %1064 = vmatpush.msrb.mxu2 %v2356_v2 }
 0x232   :  { %v681_v26 = vmul.f32 %v1664_v48, %v680_v63  ;;  %924 = vmatpush.msra.mxu0 %v2075_v34  ;;  %905 = vmatpush.msra.mxu3 %v2362_v24  ;;  %v2374_v34 = vld [vmem:[#allocation9 + $0x18] sm:$0xff] }
 0x233   :  { %1065 = vmatpush.msrb.mxu2 %v2362_v24 }
 0x234   :  { %v2280_v16 = vadd.f32 %v682_v13, %v681_v26  ;;  %925 = vmatpush.msra.mxu0 %v2083_v37  ;;  %906 = vmatpush.msra.mxu3 %v2368_v30 }
 0x235   :  { %1066 = vmatpush.msrb.mxu2 %v2368_v30 }
 0x236   :  { %749 = vmatmul.f32.vlgmr.msrb.gmra.mxu0 %v2280_v16  ;;  %769 = vmatmul.f32.vlgmr.msra.gmra.mxu1 %v2280_v16 }
 0x237   :  { %789 = vmatmul.f32.vlgmr.msra.gmra.mxu2 %v2280_v16  ;;  %1213 = vmatpush.msra.mxu1 %v2285_v27 }
 0x238   :  { %926 = vmatpush.msra.mxu0 %v2090_v39  ;;  %907 = vmatpush.msra.mxu3 %v2374_v34 }
 0x239   :  { %1214 = vmatpush.msra.mxu1 %v2289_v28  ;;  %1067 = vmatpush.msrb.mxu2 %v2374_v34 }
 0x23a   :  { %927 = vmatpush.msra.mxu0 %v2097_v41  ;;  %908 = vmatpush.msra.mxu3 %v2376_v4 }
 0x23b   :  { %1215 = vmatpush.msra.mxu1 %v2294_v14  ;;  %1068 = vmatpush.msrb.mxu2 %v2376_v4 }
 0x23c   :  { %928 = vmatpush.msra.mxu0 %v2103_v43 }
 0x23d   :  { %1216 = vmatpush.msra.mxu1 %v2299_v50 }
 0x23f   :  { %1217 = vmatpush.msra.mxu1 %v2304_v29 }
 0x241   :  { %1218 = vmatpush.msra.mxu1 %v2309_v32 }
 0x243   :  { %1219 = vmatpush.msra.mxu1 %v2316_v17 }
 0x245   :  { %1220 = vmatpush.msra.mxu1 %v2324_v47 }
 0x247   :  { %1221 = vmatpush.msra.mxu1 %v2336_v36 }
 0x249   :  { %1222 = vmatpush.msra.mxu1 %v2344_v49 }
 0x24b   :  { %1223 = vmatpush.msra.mxu1 %v2350_v1 }
 0x24d   :  { %1224 = vmatpush.msra.mxu1 %v2356_v2 }
 0x24f   :  { %1225 = vmatpush.msra.mxu1 %v2362_v24 }
 0x251   :  { %1226 = vmatpush.msra.mxu1 %v2368_v30 }
 0x253   :  { %1227 = vmatpush.msra.mxu1 %v2374_v34 }
 0x255   :  { %1228 = vmatpush.msra.mxu1 %v2376_v4 }
 0x2b3   :  { %v750_v59 = vpop.f32.mrf.mxu0  ;;  %v770_v60 = vpop.f32.mrf.mxu1 }
 0x2b4   :  { %v796_v61 = vadd.f32 %v750_v59, %v194_v53  ;;  %v816_v62 = vadd.f32 %v770_v60, %v235_v19 }
 0x2b6   :  { %v1613_v18 = vmul.f32 -1.442695, %v796_v61  ;;  %v1614_v0 = vmul.f32 -1.442695, %v816_v62  ;;  %v276_v62 = vadd.f32 %v2256_v21, %v2146_v33  ;;  %v1051_v21 = vld [vmem:[#allocation9 + $0x170] sm:$0xff] }
 0x2b7   :  { %1073 = vmatpush.msrb.mxu3 %v1051_v21  ;;  %1233 = vmatpush.msra.mxu2 %v1051_v21 }
 0x2b8   :  { %1665 = vpow2.f32 %v1613_v18 }
 0x2b9   :  { %1667 = vpow2.f32 %v1614_v0 }
 0x2ba   :  { %v790_v13 = vpop.f32.mrf.mxu2 }
 0x2bb   :  { %v836_v59 = vadd.f32 %v2154_v12, %v790_v13  ;;  %v2403_v13 = vld [vmem:[#allocation9 + $0x148] sm:$0xff] }
 0x2be   :  { %v1666_v3 = vpop.eup %1665 }
 0x2bf   :  { %v1668_v37 = vpop.eup %1667  ;;  %v800_v5 = vadd.f32 1.0, %v1666_v3 }
 0x2c0   :  { %v820_v6 = vadd.f32 1.0, %v1668_v37 }
 0x2c1   :  { %1669 = vrcp.f32 %v800_v5  ;;  %v812_v58 = vand.u32 2147483648, %v800_v5  ;;  %v810_v48 = vand.u32 2147483647, %v800_v5  ;;  %vm806_vm9 = vweird.f32 %v800_v5 }
 0x2c2   :  { %1671 = vrcp.f32 %v820_v6  ;;  %v832_v18 = vand.u32 2147483648, %v820_v6  ;;  %vm826_vm13 = vweird.f32 %v820_v6  ;;  %v830_v3 = vand.u32 2147483647, %v820_v6 }
 0x2c3   :  { %v813_v43 = vor.u32 1.1754944e-38, %v812_v58  ;;  %vm811_vm11 = vcmp.eq.f32.partialorder %v810_v48, 8.507059e+37  ;;  %v2400_v48 = vld [vmem:[#allocation9 + $0x160] sm:$0xff] }
 0x2c4   :  { %vm831_vm15 = vcmp.eq.f32.partialorder %v830_v3, 8.507059e+37  ;;  %v2424_v3 = vld [vmem:[#allocation9 + $0xd0] sm:$0xff] }
 0x2c7   :  { %v1670_v39 = vpop.eup %1669 }
 0x2c8   :  { %v1672_v7 = vpop.eup %1671  ;;  %v802_v9 = vmul.f32 %v1670_v39, %v800_v5  ;;  %vm807_vm8 = vweird.f32 %v1670_v39  ;;  %v833_v5 = vor.u32 1.1754944e-38, %v832_v18 }
 0x2c9   :  { %v822_v11 = vmul.f32 %v1672_v7, %v820_v6  ;;  %vm808_vm10 = vmor %vm806_vm9, %vm807_vm8  ;;  %vm827_vm12 = vweird.f32 %v1672_v7  ;;  %v2397_v6 = vld [vmem:[#allocation9 + $0x178] sm:$0xff] }
 0x2ca   :  { %v803_v41 = vsub.f32 1.0, %v802_v9  ;;  %vm828_vm14 = vmor %vm826_vm13, %vm827_vm12  ;;  %1093 = vmatpush.msrb.mxu0 %v2397_v6 }
 0x2cb   :  { %v823_v55 = vsub.f32 1.0, %v822_v11 }
 0x2cc   :  { %v804_v63 = vmul.f32 %v1670_v39, %v803_v41  ;;  %1094 = vmatpush.msrb.mxu0 %v2400_v48 }
 0x2cd   :  { %v824_v26 = vmul.f32 %v1672_v7, %v823_v55 }
 0x2ce   :  { %v805_v53 = vadd.f32 %v1670_v39, %v804_v63  ;;  %1095 = vmatpush.msrb.mxu0 %v2403_v13 }
 0x2cf   :  { %v825_v60 = vadd.f32 %v1672_v7, %v824_v26  ;;  %v1045_v26 = vld [vmem:[#allocation9 + $0x140] sm:$0xff] }
 0x2d0   :  { %v809_v19 = vsel %vm808_vm10, %v1670_v39, %v805_v53  ;;  %v1042_v53 = vld [vmem:[#allocation9 + $0x128] sm:$0xff] }
 0x2d1   :  { %v814_v61 = vsel %vm811_vm11, %v813_v43, %v809_v19  ;;  %v829_v9 = vsel %vm828_vm14, %v1672_v7, %v825_v60  ;;  %v1048_v7 = vld [vmem:[#allocation9 + $0x158] sm:$0xff]  ;;  %v2406_v43 = vld [vmem:[#allocation9 + $0x130] sm:$0xff]  ;;  %v238_v60 = vadd.f32 %v2258_v25, %v2053_v23 }
 0x2d2   :  { %v837_v0 = vmul.f32 %v836_v59, %v814_v61  ;;  %v834_v39 = vsel %vm831_vm15, %v833_v5, %v829_v9  ;;  %1074 = vmatpush.msrb.mxu3 %v1048_v7  ;;  %1234 = vmatpush.msra.mxu2 %v1048_v7  ;;  %v1039_v19 = vld [vmem:[#allocation9 + $0x110] sm:$0xff]  ;;  %v2409_v59 = vld [vmem:[#allocation9 + $0x118] sm:$0xff]  ;;  %v2414_v61 = vld [vmem:[#allocation9 + $0x100] sm:$0xff] }
 0x2d3   :  { %v840_v11 = vsub.f32 1.0, %v834_v39  ;;  %v842_v58 = vmul.f32 %v834_v39, %v2280_v16  ;;  %1096 = vmatpush.msrb.mxu0 %v2406_v43  ;;  %v1024_v9 = vld [vmem:[#allocation9 + $0x98] sm:$0xff]  ;;  %v2434_v5 = vld [vmem:[#allocation9 + $0xa0] sm:$0xff] }
 0x2d4   :  { %v838_v37 = vadd.f32 %v837_v0, %v276_v62  ;;  %1075 = vmatpush.msrb.mxu3 %v1045_v26  ;;  %1235 = vmatpush.msra.mxu2 %v1045_v26  ;;  %v2418_v0 = vld [vmem:[#allocation9 + $0xe8] sm:$0xff] }
 0x2d5   :  { %1097 = vmatpush.msrb.mxu0 %v2409_v59 }
 0x2d6   :  { %1673 = vtanh.f32 %v838_v37  ;;  %1076 = vmatpush.msrb.mxu3 %v1042_v53  ;;  %1236 = vmatpush.msra.mxu2 %v1042_v53  ;;  %v197_v37 = vadd.f32 %v2220_v51, %v2050_v22 }
 0x2d7   :  { %1098 = vmatpush.msrb.mxu0 %v2414_v61 }
 0x2d8   :  { %1077 = vmatpush.msrb.mxu3 %v1039_v19  ;;  %1237 = vmatpush.msra.mxu2 %v1039_v19 }
 0x2d9   :  { %1099 = vmatpush.msrb.mxu0 %v2418_v0 }
 0x2da   :  { %1078 = vmatpush.msrb.mxu3 %v2311_v15  ;;  %1238 = vmatpush.msra.mxu2 %v2311_v15 }
 0x2db   :  { %1100 = vmatpush.msrb.mxu0 %v2424_v3 }
 0x2dc   :  { %v1674_v41 = vpop.eup %1673  ;;  %1079 = vmatpush.msrb.mxu3 %v2318_v8  ;;  %1239 = vmatpush.msra.mxu2 %v2318_v8 }
 0x2dd   :  { %v841_v55 = vmul.f32 %v1674_v41, %v840_v11  ;;  %v1021_v11 = vld [vmem:[#allocation9 + $0x80] sm:$0xff]  ;;  %v2440_v41 = vld [vmem:[#allocation9 + $0x88] sm:$0xff] }
 0x2de   :  { %1080 = vmatpush.msrb.mxu3 %v2326_v20  ;;  %1240 = vmatpush.msra.mxu2 %v2326_v20 }
 0x2df   :  { %v2392_v63 = vadd.f32 %v842_v58, %v841_v55  ;;  %v1018_v55 = vld [vmem:[#allocation9 + $0x68] sm:$0xff]  ;;  %v2445_v58 = vld [vmem:[#allocation9 + $0x70] sm:$0xff] }
 0x2e0   :  { %1081 = vmatpush.msrb.mxu3 %v2338_v45  ;;  %1241 = vmatpush.msra.mxu2 %v2338_v45 }
 0x2e1   :  { %909 = vmatmul.f32.vlgmr.msra.gmra.mxu3 %v2392_v63  ;;  %929 = vmatmul.f32.vlgmr.msra.gmra.mxu0 %v2392_v63 }
 0x2e2   :  { %949 = vmatmul.f32.vlgmr.msrb.gmra.mxu1 %v2392_v63  ;;  %1082 = vmatpush.msrb.mxu3 %v1024_v9 }
 0x2e3   :  { %1393 = vmatpush.msrb.mxu1 %v1051_v21  ;;  %1242 = vmatpush.msra.mxu2 %v1024_v9  ;;  %v1015_v21 = vld [vmem:[#allocation9 + $0x50] sm:$0xff] }
 0x2e4   :  { %1083 = vmatpush.msrb.mxu3 %v1021_v11 }
 0x2e5   :  { %1394 = vmatpush.msrb.mxu1 %v1048_v7  ;;  %v2448_v7 = vld [vmem:[#allocation9 + $0x58] sm:$0xff]  ;;  %1243 = vmatpush.msra.mxu2 %v1021_v11 }
 0x2e6   :  { %1084 = vmatpush.msrb.mxu3 %v1018_v55 }
 0x2e7   :  { %1395 = vmatpush.msrb.mxu1 %v1045_v26  ;;  %v1012_v26 = vld [vmem:[#allocation9 + $0x38] sm:$0xff]  ;;  %1244 = vmatpush.msra.mxu2 %v1018_v55 }
 0x2e8   :  { %1085 = vmatpush.msrb.mxu3 %v1015_v21 }
 0x2e9   :  { %1396 = vmatpush.msrb.mxu1 %v1042_v53  ;;  %v2453_v53 = vld [vmem:[#allocation9 + $0x40] sm:$0xff]  ;;  %1245 = vmatpush.msra.mxu2 %v1015_v21 }
 0x2ea   :  { %1086 = vmatpush.msrb.mxu3 %v1012_v26 }
 0x2eb   :  { %1397 = vmatpush.msrb.mxu1 %v1039_v19  ;;  %v1009_v19 = vld [vmem:[#allocation9 + $0x20] sm:$0xff]  ;;  %1246 = vmatpush.msra.mxu2 %v1012_v26 }
 0x2ec   :  { %1087 = vmatpush.msrb.mxu3 %v1009_v19 }
 0x2ed   :  { %1398 = vmatpush.msrb.mxu1 %v2311_v15  ;;  %v2432_v15 = vld [vmem:[#allocation9 + $0xb8] sm:$0xff]  ;;  %1247 = vmatpush.msra.mxu2 %v1009_v19 }
 0x2ee   :  { %1101 = vmatpush.msrb.mxu0 %v2432_v15 }
 0x2ef   :  { %1399 = vmatpush.msrb.mxu1 %v2318_v8 }
 0x2f0   :  { %1102 = vmatpush.msrb.mxu0 %v2434_v5 }
 0x2f1   :  { %1400 = vmatpush.msrb.mxu1 %v2326_v20 }
 0x2f2   :  { %1103 = vmatpush.msrb.mxu0 %v2440_v41 }
 0x2f3   :  { %1401 = vmatpush.msrb.mxu1 %v2338_v45 }
 0x2f4   :  { %1104 = vmatpush.msrb.mxu0 %v2445_v58 }
 0x2f5   :  { %1402 = vmatpush.msrb.mxu1 %v1024_v9 }
 0x2f6   :  { %1105 = vmatpush.msrb.mxu0 %v2448_v7 }
 0x2f7   :  { %1403 = vmatpush.msrb.mxu1 %v1021_v11 }
 0x2f8   :  { %1106 = vmatpush.msrb.mxu0 %v2453_v53 }
 0x2f9   :  { %1404 = vmatpush.msrb.mxu1 %v1018_v55 }
 0x2fb   :  { %1405 = vmatpush.msrb.mxu1 %v1015_v21 }
 0x2fd   :  { %1406 = vmatpush.msrb.mxu1 %v1012_v26 }
 0x2ff   :  { %1407 = vmatpush.msrb.mxu1 %v1009_v19 }
 0x35e   :  { %v930_v62 = vpop.f32.mrf.mxu0 }
 0x35f   :  { %v976_v18 = vadd.f32 %v930_v62, %v238_v60  ;;  %v2457_v60 = vld [vmem:[#allocation9 + $0x28] sm:$0xff]  ;;  %v950_v26 = vpop.f32.mrf.mxu1 }
 0x360   :  { %1107 = vmatpush.msrb.mxu0 %v2457_v60  ;;  %v996_v19 = vadd.f32 %v2154_v12, %v950_v26 }
 0x361   :  { %v1616_v25 = vmul.f32 -1.442695, %v976_v18  ;;  %v1006_v18 = vld [vmem:[#allocation9 + $0x8] sm:$0xff] }
 0x362   :  { %1088 = vmatpush.msrb.mxu3 %v1006_v18  ;;  %1248 = vmatpush.msra.mxu2 %v1006_v18 }
 0x363   :  { %1675 = vpow2.f32 %v1616_v25  ;;  %v2460_v25 = vld [vmem:[#allocation9 + $0x10] sm:$0xff]  ;;  %1408 = vmatpush.msrb.mxu1 %v1006_v18 }
 0x364   :  { %v910_v39 = vpop.f32.mrf.mxu3  ;;  %1108 = vmatpush.msrb.mxu0 %v2460_v25  ;;  %1253 = vmatpush.msra.mxu3 %v2397_v6 }
 0x365   :  { %v956_v8 = vadd.f32 %v910_v39, %v197_v37 }
 0x366   :  { %1373 = vmatpush.msra.mxu0 %v2285_v27  ;;  %1254 = vmatpush.msra.mxu3 %v2400_v48 }
 0x367   :  { %v1615_v51 = vmul.f32 -1.442695, %v956_v8 }
 0x368   :  { %1374 = vmatpush.msra.mxu0 %v2289_v28  ;;  %1255 = vmatpush.msra.mxu3 %v2403_v13 }
 0x369   :  { %v1676_v20 = vpop.eup %1675  ;;  %1677 = vpow2.f32 %v1615_v51 }
 0x36a   :  { %v2450_v45 = vadd.f32 1.0, %v1676_v20  ;;  %1375 = vmatpush.msra.mxu0 %v2294_v14  ;;  %1256 = vmatpush.msra.mxu3 %v2406_v43 }
 0x36c   :  { %1679 = vrcp.f32 %v2450_v45  ;;  %1376 = vmatpush.msra.mxu0 %v2299_v50  ;;  %1257 = vmatpush.msra.mxu3 %v2409_v59  ;;  %vm986_vm5 = vweird.f32 %v2450_v45  ;;  %v990_v12 = vand.u32 2147483647, %v2450_v45 }
 0x36e   :  { %1377 = vmatpush.msra.mxu0 %v2304_v29  ;;  %1258 = vmatpush.msra.mxu3 %v2414_v61  ;;  %vm991_vm7 = vcmp.eq.f32.partialorder %v990_v12, 8.507059e+37 }
 0x36f   :  { %v1678_v62 = vpop.eup %1677 }
 0x370   :  { %v960_v37 = vadd.f32 1.0, %v1678_v62  ;;  %1378 = vmatpush.msra.mxu0 %v2309_v32  ;;  %1259 = vmatpush.msra.mxu3 %v2418_v0  ;;  %v279_v32 = vadd.f32 %v2260_v31, %v2146_v33 }
 0x372   :  { %1681 = vrcp.f32 %v960_v37  ;;  %v1680_v9 = vpop.eup %1679  ;;  %v972_v27 = vand.u32 2147483648, %v960_v37  ;;  %v970_v28 = vand.u32 2147483647, %v960_v37  ;;  %vm966_vm1 = vweird.f32 %v960_v37  ;;  %1379 = vmatpush.msra.mxu0 %v2316_v17  ;;  %1260 = vmatpush.msra.mxu3 %v2424_v3 }
 0x373   :  { %v982_v39 = vmul.f32 %v1680_v9, %v2450_v45  ;;  %vm987_vm4 = vweird.f32 %v1680_v9 }
 0x374   :  { %v973_v50 = vor.u32 1.1754944e-38, %v972_v27  ;;  %vm971_vm3 = vcmp.eq.f32.partialorder %v970_v28, 8.507059e+37  ;;  %1380 = vmatpush.msra.mxu0 %v2324_v47  ;;  %1261 = vmatpush.msra.mxu3 %v2432_v15  ;;  %vm988_vm6 = vmor %vm986_vm5, %vm987_vm4  ;;  %v1494_v27 = vld [vmem:[#allocation12 + $0x8] sm:$0xff] }
 0x375   :  { %v983_v51 = vsub.f32 1.0, %v982_v39 }
 0x376   :  { %1381 = vmatpush.msra.mxu0 %v2336_v36  ;;  %1262 = vmatpush.msra.mxu3 %v2434_v5 }
 0x377   :  { %v984_v21 = vmul.f32 %v1680_v9, %v983_v51  ;;  %v1496_v51 = vld [vmem:[#allocation12 + $0x18] sm:$0xff] }
 0x378   :  { %v1682_v8 = vpop.eup %1681  ;;  %1382 = vmatpush.msra.mxu0 %v2344_v49  ;;  %1263 = vmatpush.msra.mxu3 %v2440_v41 }
 0x379   :  { %v962_v11 = vmul.f32 %v1682_v8, %v960_v37  ;;  %vm967_vm0 = vweird.f32 %v1682_v8  ;;  %v985_v62 = vadd.f32 %v1680_v9, %v984_v21  ;;  %v992_v37 = vand.u32 2147483648, %v2450_v45 }
 0x37a   :  { %vm968_vm2 = vmor %vm966_vm1, %vm967_vm0  ;;  %1383 = vmatpush.msra.mxu0 %v2350_v1  ;;  %1264 = vmatpush.msra.mxu3 %v2445_v58 }
 0x37b   :  { %v963_v55 = vsub.f32 1.0, %v962_v11  ;;  %v993_v47 = vor.u32 1.1754944e-38, %v992_v37 }
 0x37c   :  { %1384 = vmatpush.msra.mxu0 %v2356_v2  ;;  %1265 = vmatpush.msra.mxu3 %v2448_v7  ;;  %v1508_v2 = vld [vmem:[#allocation12 + $0x78] sm:$0xff] }
 0x37d   :  { %v964_v20 = vmul.f32 %v1682_v8, %v963_v55  ;;  %v1495_v55 = vld [vmem:[#allocation12 + $0x10] sm:$0xff] }
 0x37e   :  { %1385 = vmatpush.msra.mxu0 %v2362_v24  ;;  %1266 = vmatpush.msra.mxu3 %v2453_v53  ;;  %v1507_v24 = vld [vmem:[#allocation12 + $0x70] sm:$0xff] }
 0x37f   :  { %v965_v14 = vadd.f32 %v1682_v8, %v964_v20  ;;  %v1493_v20 = vld [vmem:[#allocation12] sm:$0xff] }
 0x380   :  { %1386 = vmatpush.msra.mxu0 %v2368_v30  ;;  %1267 = vmatpush.msra.mxu3 %v2457_v60  ;;  %v1506_v30 = vld [vmem:[#allocation12 + $0x68] sm:$0xff] }
 0x381   :  { %v969_v29 = vsel %vm968_vm2, %v1682_v8, %v965_v14  ;;  %v989_v8 = vsel %vm988_vm6, %v1680_v9, %v985_v62 }
 0x382   :  { %v974_v18 = vsel %vm971_vm3, %v973_v50, %v969_v29  ;;  %v994_v31 = vsel %vm991_vm7, %v993_v47, %v989_v8  ;;  %1387 = vmatpush.msra.mxu0 %v2374_v34  ;;  %1268 = vmatpush.msra.mxu3 %v2460_v25  ;;  %v1505_v34 = vld [vmem:[#allocation12 + $0x60] sm:$0xff] }
 0x383   :  { %v997_v39 = vmul.f32 %v996_v19, %v974_v18  ;;  %v1000_v36 = vsub.f32 1.0, %v994_v31  ;;  %v1002_v9 = vmul.f32 %v994_v31, %v2392_v63 }
 0x384   :  { %1388 = vmatpush.msra.mxu0 %v2376_v4  ;;  %v200_v4 = vadd.f32 %v2222_v54, %v2050_v22  ;;  %v1499_v54 = vld [vmem:[#allocation12 + $0x30] sm:$0xff] }
 0x385   :  { %v998_v17 = vadd.f32 %v997_v39, %v279_v32 }
 0x387   :  { %1683 = vtanh.f32 %v998_v17  ;;  %v2532_v17 = vld [vmem:[%s2594_s4] ss:$0 sm:$0xff] }
 0x38d   :  { %v1684_v45 = vpop.eup %1683 }
 0x38e   :  { %v1001_v49 = vmul.f32 %v1684_v45, %v1000_v36  ;;  %v282_v45 = vadd.f32 %v2264_v38, %v2146_v33  ;;  %v203_v38 = vadd.f32 %v2224_v56, %v2050_v22 }
 0x390   :  { %v2501_v1 = vadd.f32 %v1002_v9, %v1001_v49 }
 0x392   :  { %1069 = vmatmul.f32.vlgmr.msrb.gmra.mxu2 %v2501_v1  ;;  %1089 = vmatmul.f32.vlgmr.msrb.gmra.mxu3 %v2501_v1 }
 0x393   :  { %1109 = vmatmul.f32.vlgmr.msrb.gmra.mxu0 %v2501_v1  ;;  %1413 = vmatpush.msrb.mxu2 %v2397_v6  ;;  %v241_v6 = vadd.f32 %v2262_v35, %v2053_v23  ;;  %v1498_v35 = vld [vmem:[#allocation12 + $0x28] sm:$0xff] }
 0x394   :  { %1513 = vmatpush.msrb.mxu3 %v1508_v2 }
 0x395   :  { %1414 = vmatpush.msrb.mxu2 %v2400_v48  ;;  %v1504_v48 = vld [vmem:[#allocation12 + $0x58] sm:$0xff] }
 0x396   :  { %1514 = vmatpush.msrb.mxu3 %v1507_v24 }
 0x397   :  { %1415 = vmatpush.msrb.mxu2 %v2403_v13  ;;  %v1503_v13 = vld [vmem:[#allocation12 + $0x50] sm:$0xff] }
 0x398   :  { %1515 = vmatpush.msrb.mxu3 %v1506_v30 }
 0x399   :  { %1416 = vmatpush.msrb.mxu2 %v2406_v43 }
 0x39a   :  { %1516 = vmatpush.msrb.mxu3 %v1505_v34 }
 0x39b   :  { %1417 = vmatpush.msrb.mxu2 %v2409_v59 }
 0x39c   :  { %1517 = vmatpush.msrb.mxu3 %v1504_v48 }
 0x39d   :  { %1418 = vmatpush.msrb.mxu2 %v2414_v61 }
 0x39e   :  { %1518 = vmatpush.msrb.mxu3 %v1503_v13 }
 0x39f   :  { %1419 = vmatpush.msrb.mxu2 %v2418_v0 }
 0x3a1   :  { %1420 = vmatpush.msrb.mxu2 %v2424_v3  ;;  %v1502_v3 = vld [vmem:[#allocation12 + $0x48] sm:$0xff] }
 0x3a2   :  { %1519 = vmatpush.msrb.mxu3 %v1502_v3 }
 0x3a3   :  { %1421 = vmatpush.msrb.mxu2 %v2432_v15 }
 0x3a5   :  { %1422 = vmatpush.msrb.mxu2 %v2434_v5 }
 0x3a7   :  { %1423 = vmatpush.msrb.mxu2 %v2440_v41  ;;  %v1501_v41 = vld [vmem:[#allocation12 + $0x40] sm:$0xff] }
 0x3a8   :  { %1520 = vmatpush.msrb.mxu3 %v1501_v41 }
 0x3a9   :  { %1424 = vmatpush.msrb.mxu2 %v2445_v58  ;;  %v1500_v58 = vld [vmem:[#allocation12 + $0x38] sm:$0xff] }
 0x3aa   :  { %1521 = vmatpush.msrb.mxu3 %v1500_v58 }
 0x3ab   :  { %1425 = vmatpush.msrb.mxu2 %v2448_v7 }
 0x3ac   :  { %1522 = vmatpush.msrb.mxu3 %v1499_v54 }
 0x3ad   :  { %1426 = vmatpush.msrb.mxu2 %v2453_v53  ;;  %v1497_v53 = vld [vmem:[#allocation12 + $0x20] sm:$0xff] }
 0x3ae   :  { %1523 = vmatpush.msrb.mxu3 %v1498_v35 }
 0x3af   :  { %1427 = vmatpush.msrb.mxu2 %v2457_v60 }
 0x3b0   :  { %1524 = vmatpush.msrb.mxu3 %v1497_v53 }
 0x3b1   :  { %1428 = vmatpush.msrb.mxu2 %v2460_v25 }
 0x3b2   :  { %1525 = vmatpush.msrb.mxu3 %v1496_v51 }
 0x3b4   :  { %1526 = vmatpush.msrb.mxu3 %v1495_v55 }
 0x3b6   :  { %1527 = vmatpush.msrb.mxu3 %v1494_v27 }
 0x3b8   :  { %1528 = vmatpush.msrb.mxu3 %v1493_v20 }
 0x410   :  { %v1110_v32 = vpop.f32.mrf.mxu0 }
 0x411   :  { %v1156_v8 = vadd.f32 %v2532_v17, %v1110_v32  ;;  %v285_v32 = vadd.f32 %v2268_v42, %v2146_v33 }
 0x415   :  { %v1070_v43 = vpop.f32.mrf.mxu2  ;;  %v1090_v59 = vpop.f32.mrf.mxu3 }
 0x416   :  { %v1116_v61 = vadd.f32 %v1070_v43, %v200_v4  ;;  %v1136_v0 = vadd.f32 %v1090_v59, %v241_v6 }
 0x418   :  { %v1617_v15 = vmul.f32 -1.442695, %v1116_v61  ;;  %v1618_v5 = vmul.f32 -1.442695, %v1136_v0 }
 0x41a   :  { %1685 = vpow2.f32 %v1617_v15  ;;  %v244_v15 = vadd.f32 %v2266_v40, %v2053_v23 }
 0x41b   :  { %1687 = vpow2.f32 %v1618_v5 }
 0x420   :  { %v1686_v7 = vpop.eup %1685 }
 0x421   :  { %v1688_v60 = vpop.eup %1687  ;;  %v1120_v25 = vadd.f32 1.0, %v1686_v7 }
 0x422   :  { %v1140_v11 = vadd.f32 1.0, %v1688_v60 }
 0x423   :  { %1689 = vrcp.f32 %v1120_v25  ;;  %v1132_v19 = vand.u32 2147483648, %v1120_v25  ;;  %v1130_v18 = vand.u32 2147483647, %v1120_v25  ;;  %vm1126_vm9 = vweird.f32 %v1120_v25 }
 0x424   :  { %1691 = vrcp.f32 %v1140_v11  ;;  %v1152_v9 = vand.u32 2147483648, %v1140_v11  ;;  %vm1146_vm13 = vweird.f32 %v1140_v11  ;;  %v1150_v2 = vand.u32 2147483647, %v1140_v11 }
 0x425   :  { %v1133_v12 = vor.u32 1.1754944e-38, %v1132_v19  ;;  %vm1131_vm11 = vcmp.eq.f32.partialorder %v1130_v18, 8.507059e+37 }
 0x426   :  { %v1153_v34 = vor.u32 1.1754944e-38, %v1152_v9  ;;  %vm1151_vm15 = vcmp.eq.f32.partialorder %v1150_v2, 8.507059e+37 }
 0x429   :  { %v1690_v28 = vpop.eup %1689 }
 0x42a   :  { %v1692_v21 = vpop.eup %1691  ;;  %v1122_v26 = vmul.f32 %v1690_v28, %v1120_v25  ;;  %vm1127_vm8 = vweird.f32 %v1690_v28 }
 0x42b   :  { %v1142_v14 = vmul.f32 %v1692_v21, %v1140_v11  ;;  %vm1128_vm10 = vmor %vm1126_vm9, %vm1127_vm8  ;;  %vm1147_vm12 = vweird.f32 %v1692_v21 }
 0x42c   :  { %v1123_v50 = vsub.f32 1.0, %v1122_v26  ;;  %vm1148_vm14 = vmor %vm1146_vm13, %vm1147_vm12 }
 0x42d   :  { %v1143_v29 = vsub.f32 1.0, %v1142_v14 }
 0x42e   :  { %v1124_v62 = vmul.f32 %v1690_v28, %v1123_v50 }
 0x42f   :  { %v1144_v37 = vmul.f32 %v1692_v21, %v1143_v29 }
 0x430   :  { %v1125_v39 = vadd.f32 %v1690_v28, %v1124_v62 }
 0x431   :  { %v1145_v36 = vadd.f32 %v1692_v21, %v1144_v37 }
 0x432   :  { %v1129_v47 = vsel %vm1128_vm10, %v1690_v28, %v1125_v39 }
 0x433   :  { %v1134_v31 = vsel %vm1131_vm11, %v1133_v12, %v1129_v47  ;;  %v1149_v30 = vsel %vm1148_vm14, %v1692_v21, %v1145_v36 }
 0x434   :  { %v1157_v49 = vmul.f32 %v1156_v8, %v1134_v31  ;;  %v1154_v4 = vsel %vm1151_vm15, %v1153_v34, %v1149_v30 }
 0x435   :  { %v1160_v6 = vsub.f32 1.0, %v1154_v4  ;;  %v1162_v43 = vmul.f32 %v1154_v4, %v2501_v1 }
 0x436   :  { %v1158_v24 = vadd.f32 %v1157_v49, %v282_v45 }
 0x438   :  { %1693 = vtanh.f32 %v1158_v24 }
 0x43e   :  { %v1694_v48 = vpop.eup %1693 }
 0x43f   :  { %v1161_v13 = vmul.f32 %v1694_v48, %v1160_v6 }
 0x441   :  { %v2538_v59 = vadd.f32 %v1162_v43, %v1161_v13 }
 0x443   :  { %1229 = vmatmul.f32.vlgmr.msra.gmra.mxu1 %v2538_v59  ;;  %1249 = vmatmul.f32.vlgmr.msra.gmra.mxu2 %v2538_v59 }
 0x444   :  { %1269 = vmatmul.f32.vlgmr.msra.gmra.mxu3 %v2538_v59 }
 0x44c   :  { %1529 = vmatmul.f32.vlgmr.msrb.gmra.mxu3 %v2183_v46 }
 0x454   :  { %1532 = vmatmul.f32.gmra.mxu3 %v2233_v10 }
 0x45c   :  { %1535 = vmatmul.f32.gmra.mxu3 %v2280_v16 }
 0x464   :  { %1538 = vmatmul.f32.gmra.mxu3 %v2392_v63 }
 0x46c   :  { %1541 = vmatmul.f32.gmra.mxu3 %v2501_v1  ;;  %v2556_v1 = vld [vmem:[%s2596_s6] ss:$0 sm:$0xff]  ;;  %s1877_s6 = smov [#allocation13]  }
 0x46d   :  { %s1590_s30 = sshll.u32 %s1877_s6, 4  ;;  %s1591_s30 = int_to_ptr.vmem [resolvable:$true] %s1590_s30 }
 0x474   :  { %1544 = vmatmul.f32.gmra.mxu3 %v2538_v59 }
 0x4c0   :  { %v1230_v61 = vpop.f32.mrf.mxu1 }
 0x4c1   :  { %v1276_v0 = vadd.f32 %v1230_v61, %v203_v38 }
 0x4c3   :  { %v1619_v3 = vmul.f32 -1.442695, %v1276_v0 }
 0x4c5   :  { %1695 = vpow2.f32 %v1619_v3 }
 0x4c6   :  { %v1250_v46 = vpop.f32.mrf.mxu2 }
 0x4c7   :  { %v1296_v10 = vadd.f32 %v1250_v46, %v244_v15  ;;  %v1270_v5 = vpop.f32.mrf.mxu3 }
 0x4c8   :  { %v1316_v18 = vadd.f32 %v2532_v17, %v1270_v5 }
 0x4c9   :  { %v1620_v16 = vmul.f32 -1.442695, %v1296_v10 }
 0x4cb   :  { %v1696_v41 = vpop.eup %1695  ;;  %1697 = vpow2.f32 %v1620_v16 }
 0x4cc   :  { %v1280_v63 = vadd.f32 1.0, %v1696_v41 }
 0x4ce   :  { %1699 = vrcp.f32 %v1280_v63  ;;  %v1292_v51 = vand.u32 2147483648, %v1280_v63  ;;  %v1290_v20 = vand.u32 2147483647, %v1280_v63  ;;  %vm1286_vm3 = vweird.f32 %v1280_v63 }
 0x4cf   :  { %v1530_v56 = vpop.f32.mrf.mxu3 }
 0x4d0   :  { %v1531_v58 = vadd.f32 %v2556_v1, %v1530_v56  ;;  %v1293_v50 = vor.u32 1.1754944e-38, %v1292_v51  ;;  %vm1291_vm5 = vcmp.eq.f32.partialorder %v1290_v20, 8.507059e+37  ;;  %v247_v56 = vadd.f32 %v2270_v44, %v2053_v23 }
 0x4d1   :  { %v1698_v54 = vpop.eup %1697 }
 0x4d2   :  { %v1300_v35 = vadd.f32 1.0, %v1698_v54  ;;  %vm1554_vm0 = vcmp.ge.f32.partialorder %v1531_v58, 0.0  ;;  %v1562_v40 = vmul.f32 0.01, %v1531_v58 }
 0x4d4   :  { %v1700_v7 = vpop.eup %1699  ;;  %1701 = vrcp.f32 %v1300_v35  ;;  %v1570_v60 = vsel %vm1554_vm0, %v1531_v58, %v1562_v40  ;;  %v1312_v12 = vand.u32 2147483648, %v1300_v35  ;;  %v1310_v31 = vand.u32 2147483647, %v1300_v35 }
 0x4d5   :  { %v1282_v53 = vmul.f32 %v1700_v7, %v1280_v63  ;;  %1578 = vst [vmem:[#allocation13] sm:$0xff] %v1570_v60  ;;  %vm1287_vm1 = vweird.f32 %v1700_v7  ;;  %vm1306_vm7 = vweird.f32 %v1300_v35  ;;  %v206_v63 = vadd.f32 %v2226_v57, %v2050_v22 }
 0x4d6   :  { %vm1288_vm4 = vmor %vm1286_vm3, %vm1287_vm1  ;;  %v1313_v2 = vor.u32 1.1754944e-38, %v1312_v12  ;;  %vm1311_vm10 = vcmp.eq.f32.partialorder %v1310_v31, 8.507059e+37 }
 0x4d7   :  { %v1283_v25 = vsub.f32 1.0, %v1282_v53  ;;  %v1533_v11 = vpop.f32.mrf.mxu3 }
 0x4d8   :  { %v1534_v55 = vadd.f32 %v2556_v1, %v1533_v11 }
 0x4d9   :  { %v1284_v27 = vmul.f32 %v1700_v7, %v1283_v25 }
 0x4da   :  { %v1702_v28 = vpop.eup %1701  ;;  %vm1555_vm2 = vcmp.ge.f32.partialorder %v1534_v55, 0.0  ;;  %v1563_v21 = vmul.f32 0.01, %v1534_v55 }
 0x4db   :  { %v1302_v26 = vmul.f32 %v1702_v28, %v1300_v35  ;;  %v1285_v14 = vadd.f32 %v1700_v7, %v1284_v27  ;;  %vm1307_vm6 = vweird.f32 %v1702_v28 }
 0x4dc   :  { %v1571_v19 = vsel %vm1555_vm2, %v1534_v55, %v1563_v21  ;;  %vm1308_vm8 = vmor %vm1306_vm7, %vm1307_vm6 }
 0x4dd   :  { %v1303_v29 = vsub.f32 1.0, %v1302_v26  ;;  %v1289_v62 = vsel %vm1288_vm4, %v1700_v7, %v1285_v14  ;;  %1579 = vst [vmem:[#allocation13 + $0x8] sm:$0xff] %v1571_v19 }
 0x4de   :  { %v1294_v37 = vsel %vm1291_vm5, %v1293_v50, %v1289_v62 }
 0x4df   :  { %v1304_v39 = vmul.f32 %v1702_v28, %v1303_v29  ;;  %v1317_v8 = vmul.f32 %v1316_v18, %v1294_v37  ;;  %v1536_v47 = vpop.f32.mrf.mxu3 }
 0x4e0   :  { %v1537_v36 = vadd.f32 %v2556_v1, %v1536_v47  ;;  %v288_v47 = vadd.f32 %v2272_v52, %v2146_v33 }
 0x4e1   :  { %v1305_v45 = vadd.f32 %v1702_v28, %v1304_v39  ;;  %v1318_v49 = vadd.f32 %v1317_v8, %v285_v32 }
 0x4e2   :  { %vm1556_vm9 = vcmp.ge.f32.partialorder %v1537_v36, 0.0  ;;  %v1564_v9 = vmul.f32 0.01, %v1537_v36 }
 0x4e3   :  { %v1309_v24 = vsel %vm1308_vm8, %v1702_v28, %v1305_v45  ;;  %1703 = vtanh.f32 %v1318_v49 }
 0x4e4   :  { %v1572_v42 = vsel %vm1556_vm9, %v1537_v36, %v1564_v9  ;;  %v1314_v30 = vsel %vm1311_vm10, %v1313_v2, %v1309_v24 }
 0x4e5   :  { %1580 = vst [vmem:[#allocation13 + $0x10] sm:$0xff] %v1572_v42  ;;  %v1320_v4 = vsub.f32 1.0, %v1314_v30  ;;  %v1322_v38 = vmul.f32 %v1314_v30, %v2538_v59 }
 0x4e7   :  { %v1539_v34 = vpop.f32.mrf.mxu3 }
 0x4e8   :  { %v1540_v6 = vadd.f32 %v2556_v1, %v1539_v34 }
 0x4e9   :  { %v1704_v48 = vpop.eup %1703 }
 0x4ea   :  { %v1321_v13 = vmul.f32 %v1704_v48, %v1320_v4  ;;  %vm1557_vm11 = vcmp.ge.f32.partialorder %v1540_v6, 0.0  ;;  %v1565_v43 = vmul.f32 0.01, %v1540_v6 }
 0x4ec   :  { %v1573_v61 = vsel %vm1557_vm11, %v1540_v6, %v1565_v43  ;;  %v2566_v0 = vadd.f32 %v1322_v38, %v1321_v13 }
 0x4ed   :  { %1581 = vst [vmem:[#allocation13 + $0x18] sm:$0xff] %v1573_v61 }
 0x4ee   :  { %1389 = vmatmul.f32.vlgmr.msra.gmra.mxu0 %v2566_v0  ;;  %1409 = vmatmul.f32.vlgmr.msrb.gmra.mxu1 %v2566_v0 }
 0x4ef   :  { %1429 = vmatmul.f32.vlgmr.msrb.gmra.mxu2 %v2566_v0  ;;  %v1542_v3 = vpop.f32.mrf.mxu3  ;;  %1547 = vmatmul.f32.gmra.mxu3 %v2566_v0 }
 0x4f0   :  { %v1543_v15 = vadd.f32 %v2556_v1, %v1542_v3 }
 0x4f2   :  { %vm1558_vm12 = vcmp.ge.f32.partialorder %v1543_v15, 0.0  ;;  %v1566_v46 = vmul.f32 0.01, %v1543_v15 }
 0x4f4   :  { %v1574_v10 = vsel %vm1558_vm12, %v1543_v15, %v1566_v46 }
 0x4f5   :  { %1582 = vst [vmem:[#allocation13 + $0x20] sm:$0xff] %v1574_v10 }
 0x4f7   :  { %v1545_v59 = vpop.f32.mrf.mxu3 }
 0x4f8   :  { %v1546_v5 = vadd.f32 %v2556_v1, %v1545_v59 }
 0x4fa   :  { %vm1559_vm13 = vcmp.ge.f32.partialorder %v1546_v5, 0.0  ;;  %v1567_v16 = vmul.f32 0.01, %v1546_v5 }
 0x4fc   :  { %v1575_v41 = vsel %vm1559_vm13, %v1546_v5, %v1567_v16 }
 0x4fd   :  { %1583 = vst [vmem:[#allocation13 + $0x28] sm:$0xff] %v1575_v41 }
 0x56b   :  { %v1390_v58 = vpop.f32.mrf.mxu0  ;;  %v1410_v54 = vpop.f32.mrf.mxu1 }
 0x56c   :  { %v1436_v35 = vadd.f32 %v1390_v58, %v206_v63  ;;  %v1456_v40 = vadd.f32 %v1410_v54, %v247_v56 }
 0x56e   :  { %v1621_v7 = vmul.f32 -1.442695, %v1436_v35  ;;  %v1622_v53 = vmul.f32 -1.442695, %v1456_v40 }
 0x570   :  { %1705 = vpow2.f32 %v1621_v7 }
 0x571   :  { %1707 = vpow2.f32 %v1622_v53 }
 0x572   :  { %v1548_v60 = vpop.f32.mrf.mxu3  ;;  %v1430_v29 = vpop.f32.mrf.mxu2 }
 0x573   :  { %v1549_v25 = vadd.f32 %v2556_v1, %v1548_v60  ;;  %v1476_v39 = vadd.f32 %v2532_v17, %v1430_v29 }
 0x575   :  { %vm1560_vm14 = vcmp.ge.f32.partialorder %v1549_v25, 0.0  ;;  %v1568_v11 = vmul.f32 0.01, %v1549_v25 }
 0x576   :  { %v1706_v51 = vpop.eup %1705 }
 0x577   :  { %v1708_v55 = vpop.eup %1707  ;;  %v1440_v27 = vadd.f32 1.0, %v1706_v51  ;;  %v1576_v22 = vsel %vm1560_vm14, %v1549_v25, %v1568_v11 }
 0x578   :  { %v1460_v57 = vadd.f32 1.0, %v1708_v55  ;;  %1584 = vst [vmem:[#allocation13 + $0x30] sm:$0xff] %v1576_v22 }
 0x579   :  { %1709 = vrcp.f32 %v1440_v27  ;;  %v1452_v26 = vand.u32 2147483648, %v1440_v27  ;;  %v1450_v19 = vand.u32 2147483647, %v1440_v27  ;;  %vm1446_vm0 = vweird.f32 %v1440_v27 }
 0x57a   :  { %1711 = vrcp.f32 %v1460_v57  ;;  %v1472_v36 = vand.u32 2147483648, %v1460_v57  ;;  %vm1466_vm4 = vweird.f32 %v1460_v57  ;;  %v1470_v45 = vand.u32 2147483647, %v1460_v57 }
 0x57b   :  { %v1453_v32 = vor.u32 1.1754944e-38, %v1452_v26  ;;  %vm1451_vm2 = vcmp.eq.f32.partialorder %v1450_v19, 8.507059e+37 }
 0x57c   :  { %v1473_v2 = vor.u32 1.1754944e-38, %v1472_v36  ;;  %vm1471_vm6 = vcmp.eq.f32.partialorder %v1470_v45, 8.507059e+37 }
 0x57f   :  { %v1710_v23 = vpop.eup %1709 }
 0x580   :  { %v1712_v44 = vpop.eup %1711  ;;  %v1442_v20 = vmul.f32 %v1710_v23, %v1440_v27  ;;  %vm1447_vm15 = vweird.f32 %v1710_v23 }
 0x581   :  { %v1462_v28 = vmul.f32 %v1712_v44, %v1460_v57  ;;  %vm1448_vm1 = vmor %vm1446_vm0, %vm1447_vm15  ;;  %vm1467_vm3 = vweird.f32 %v1712_v44 }
 0x582   :  { %v1443_v21 = vsub.f32 1.0, %v1442_v20  ;;  %vm1468_vm5 = vmor %vm1466_vm4, %vm1467_vm3 }
 0x583   :  { %v1463_v14 = vsub.f32 1.0, %v1462_v28 }
 0x584   :  { %v1444_v50 = vmul.f32 %v1710_v23, %v1443_v21 }
 0x585   :  { %v1464_v62 = vmul.f32 %v1712_v44, %v1463_v14 }
 0x586   :  { %v1445_v18 = vadd.f32 %v1710_v23, %v1444_v50 }
 0x587   :  { %v1465_v8 = vadd.f32 %v1712_v44, %v1464_v62 }
 0x588   :  { %v1449_v37 = vsel %vm1448_vm1, %v1710_v23, %v1445_v18 }
 0x589   :  { %v1454_v12 = vsel %vm1451_vm2, %v1453_v32, %v1449_v37  ;;  %v1469_v9 = vsel %vm1468_vm5, %v1712_v44, %v1465_v8 }
 0x58a   :  { %v1477_v31 = vmul.f32 %v1476_v39, %v1454_v12  ;;  %v1474_v24 = vsel %vm1471_vm6, %v1473_v2, %v1469_v9 }
 0x58b   :  { %v1480_v42 = vsub.f32 1.0, %v1474_v24  ;;  %v1482_v34 = vmul.f32 %v1474_v24, %v2566_v0 }
 0x58c   :  { %v1478_v49 = vadd.f32 %v1477_v31, %v288_v47 }
 0x58e   :  { %1713 = vtanh.f32 %v1478_v49 }
 0x594   :  { %v1714_v30 = vpop.eup %1713 }
 0x595   :  { %v1481_v17 = vmul.f32 %v1714_v30, %v1480_v42 }
 0x597   :  { %v1483_v4 = vadd.f32 %v1482_v34, %v1481_v17 }
 0x599   :  { %1550 = vmatmul.f32.gmra.mxu3 %v1483_v4 }
 0x61c   :  { %v1551_v6 = vpop.f32.mrf.mxu3 }
 0x61d   :  { %v1552_v33 = vadd.f32 %v2556_v1, %v1551_v6 }
 0x61f   :  { %vm1561_vm7 = vcmp.ge.f32.partialorder %v1552_v33, 0.0  ;;  %v1569_v52 = vmul.f32 0.01, %v1552_v33 }
 0x621   :  { %v1577_v48 = vsel %vm1561_vm7, %v1552_v33, %v1569_v52 }
 0x622   :  { %1585 = vst [vmem:[#allocation13 + $0x38] sm:$0xff] %v1577_v48 }
 0x623   :  { %1598 = dma.vmem_to_hbm [thread:$0]  %s1591_s30, 1024, %s1593_s10, [#allocation6], %s1873_s19, %s1873_s19, %s1874_s20  }
 0x624   :  { %1866 = dma.done.wait [#allocation6], 1024  }
 0x625   :  { %1867 = vsyncadd [#allocation6], 4294966272 }
 0x626   :  { %1603 = vsyncpa [#allocation5], 1 }
 0x627   :  { %1604 = vsyncpa [#allocation8], 1 }
 0x628   :  { %1605 = vsyncpa [#allocation11], 1 }
 0x629   :  { %1606 = vsyncpa [#allocation6], 1 }

</bundles_post_ra>
